<compile_context>
chip_gen: v6e
topology: v6e:2x2x1
jax: 0.10.0
libtpu: 0.0.40
codegen_flags: <defaults>
</compile_context>

<pallas_src>
import jax
import jax.numpy as jnp
from jax import lax
from jax.experimental import pallas as pl
from jax.experimental.pallas import tpu as pltpu

_LANES = 512        # lane width of the batch-major layout (multiple of 128)
_CHUNK_ROWS = 8     # sublane-dense rows processed per inner-loop chunk
_MAX_TILE_ROWS = 64 # rows per grid step (=> 64 * 512 = 32768 elements / step)


def _round_up(n, m):
    return ((n + m - 1) // m) * m


def _pca_classifier_kernel(x_ref, w1_ref, b1_ref, w2_ref, b2_ref, o_ref):
    # x_ref: [2, RB, LW] VMEM (feature, row, lane); o_ref: [RB, LW] VMEM.
    # Weights sit whole in SMEM; no MXU (K=6/8 would waste the systolic array),
    # the two Linear layers become unrolled VPU broadcast FMAs.

    # Hoist all 65 scalar weight reads (sld + splat) out of the chunk loop.
    w1 = [[w1_ref[k, j] for j in range(8)] for k in range(6)]
    b1 = [b1_ref[0, j] for j in range(8)]
    w2 = [w2_ref[j, 0] for j in range(8)]
    b2 = b2_ref[0, 0]

    n_chunks = o_ref.shape[0] // _CHUNK_ROWS  # static

    def chunk_body(c, carry):
        r = pl.multiple_of(c * _CHUNK_ROWS, _CHUNK_ROWS)
        x1 = x_ref[0, pl.ds(r, _CHUNK_ROWS), :]          # [8, LW]
        x2 = x_ref[1, pl.ds(r, _CHUNK_ROWS), :]          # [8, LW]
        # sin() lowers to a VPU polynomial (not EUP); kept for correctness.
        feats = (x1, x2, x1 * x1, x2 * x2, jnp.sin(x1), jnp.sin(x2))

        acc = jnp.full_like(x1, b2)                       # layer_2 bias
        for j in range(8):                                # hidden units
            h = feats[0] * w1[0][j]
            for k in range(1, 6):                         # input features
                h = h + feats[k] * w1[k][j]
            h = jnp.maximum(h + b1[j], 0.0)               # ReLU(layer_1)
            acc = acc + h * w2[j]                         # layer_2
        o_ref[pl.ds(r, _CHUNK_ROWS), :] = acc.astype(o_ref.dtype)
        return carry

    lax.fori_loop(0, n_chunks, chunk_body, 0, unroll=True)


def _tile_rows(r_total):
    """Rows per grid step: as big as possible, but aim for >= ~4 grid steps."""
    quarter = _round_up(-(-r_total // 4), _CHUNK_ROWS)
    return min(_MAX_TILE_ROWS, max(_CHUNK_ROWS, quarter))


def _pca_forward_lanes(x_t, w1, b1, w2, b2, *, tile_rows):
    """x_t: [2, R, LW] pre-laid-out float32; returns logits slab [R, LW]."""
    _, R, LW = x_t.shape
    assert R % tile_rows == 0 and tile_rows % _CHUNK_ROWS == 0 and LW % 128 == 0
    n = R * LW
    smem_spec = pl.BlockSpec(memory_space=pltpu.MemorySpace.SMEM)

    return pl.pallas_call(
        _pca_classifier_kernel,
        out_shape=jax.ShapeDtypeStruct((R, LW), jnp.float32),
        grid=(R // tile_rows,),
        in_specs=[
            pl.BlockSpec((2, tile_rows, LW), lambda i: (0, i, 0)),  # x
            smem_spec,                                              # W1 [6, 8]
            smem_spec,                                              # b1 [1, 8]
            smem_spec,                                              # W2 [8, 1]
            smem_spec,                                              # b2 [1, 1]
        ],
        out_specs=pl.BlockSpec((tile_rows, LW), lambda i: (i, 0)),
        compiler_params=pltpu.CompilerParams(
            dimension_semantics=("parallel",),
        ),
        cost_estimate=pl.CostEstimate(
            flops=130 * n,
            transcendentals=2 * n,
            bytes_accessed=12 * n + 4 * (6 * 8 + 8 + 8 + 1),
        ),
    )(x_t, w1, b1, w2, b2)


def pca_binary_classifier(x, w1, b1, w2, b2):
    """x: [B, 2] float32. Returns [B, 1] float32 logits."""
    B = x.shape[0]
    rows_needed = max(1, -(-B // _LANES))
    rb = _tile_rows(_round_up(rows_needed, _CHUNK_ROWS))
    r_pad = _round_up(rows_needed, rb)
    b_pad = r_pad * _LANES

    xf = x.astype(jnp.float32)
    if b_pad != B:
        xf = jnp.pad(xf, ((0, b_pad - B), (0, 0)))
    # One-time batch->lanes layout pass.  Producers that can emit the
    # [2, R, LANES] layout directly should call _pca_forward_lanes and skip it.
    x_t = jnp.transpose(xf).reshape(2, r_pad, _LANES)

    slab = _pca_forward_lanes(x_t, w1, b1, w2, b2, tile_rows=rb)
    return slab.reshape(-1)[:B].reshape(B, 1)


def _reference_forward(x, w1, b1, w2, b2):
    x1 = x[:, 0:1]
    x2 = x[:, 1:2]
    feats = jnp.concatenate(
        [x1, x2, x1**2, x2**2, jnp.sin(x1), jnp.sin(x2)], axis=1
    )
    h = jnp.maximum(feats @ w1 + b1, 0.0)
    return h @ w2 + b2


if __name__ == "__main__":
    key = jax.random.PRNGKey(0)
    k_x, k_w1, k_b1, k_w2, k_b2, k_x2 = jax.random.split(key, 6)

    # Deterministic synthetic parameters (PyTorch-style uniform(+-1/sqrt(fan_in))).
    lim1 = 1.0 / jnp.sqrt(6.0)
    lim2 = 1.0 / jnp.sqrt(8.0)
    w1 = jax.random.uniform(k_w1, (6, 8), jnp.float32, -lim1, lim1)
    b1 = jax.random.uniform(k_b1, (1, 8), jnp.float32, -lim1, lim1)
    w2 = jax.random.uniform(k_w2, (8, 1), jnp.float32, -lim2, lim2)
    b2 = jax.random.uniform(k_b2, (1, 1), jnp.float32, -lim2, lim2)

    # Small batch (as in the module spec).
    B = 8
    x = jax.random.normal(k_x, (B, 2), dtype=jnp.float32)
    out = jax.block_until_ready(pca_binary_classifier(x, w1, b1, w2, b2))
    ref = _reference_forward(x, w1, b1, w2, b2)
    assert out.shape == (B, 1), out.shape
    assert jnp.allclose(out, ref, atol=1e-5, rtol=1e-5), (out, ref)

    # Second check: large, non-aligned batch (exercises tail padding, the
    # multi-chunk inner loop and a multi-step grid).
    B2 = 70000
    x_big = jax.random.normal(k_x2, (B2, 2), dtype=jnp.float32)
    out2 = jax.block_until_ready(pca_binary_classifier(x_big, w1, b1, w2, b2))
    ref2 = _reference_forward(x_big, w1, b1, w2, b2)
    assert out2.shape == (B2, 1), out2.shape
    assert jnp.allclose(out2, ref2, atol=1e-5, rtol=1e-5)

    print("KERNEL_OK")
</pallas_src>

<mosaic_0001>
module attributes {stable_mosaic.version = 11 : i64} {
  func.func @_pca_classifier_kernel(%arg0: i32, %arg1: memref<2x8x512xf32, #tpu.memory_space<vmem>>, %arg2: memref<6x8xf32, #tpu.memory_space<smem>>, %arg3: memref<1x8xf32, #tpu.memory_space<smem>>, %arg4: memref<8x1xf32, #tpu.memory_space<smem>>, %arg5: memref<1x1xf32, #tpu.memory_space<smem>>, %arg6: memref<8x512xf32, #tpu.memory_space<vmem>>) attributes {dimension_semantics = [#tpu.dimension_semantics<parallel>], iteration_bounds = array<i64: 1>, scalar_prefetch = 0 : i64, scratch_operands = 0 : i64, tpu.core_type = #tpu.core_type<tc>, window_params = [{transform_indices = @transform_0, window_bounds = array<i64: 2, 8, 512>}, {transform_indices = @transform_1, window_bounds = array<i64: 6, 8>}, {transform_indices = @transform_2, window_bounds = array<i64: 1, 8>}, {transform_indices = @transform_3, window_bounds = array<i64: 8, 1>}, {transform_indices = @transform_4, window_bounds = array<i64: 1, 1>}, {transform_indices = @transform_5, window_bounds = array<i64: 8, 512>}]} {
    %c0 = arith.constant 0 : index
    %c0_0 = arith.constant 0 : index
    %0 = memref.load %arg2[%c0, %c0_0] : memref<6x8xf32, #tpu.memory_space<smem>>
    %c0_1 = arith.constant 0 : index
    %c1 = arith.constant 1 : index
    %1 = memref.load %arg2[%c0_1, %c1] : memref<6x8xf32, #tpu.memory_space<smem>>
    %c0_2 = arith.constant 0 : index
    %c2 = arith.constant 2 : index
    %2 = memref.load %arg2[%c0_2, %c2] : memref<6x8xf32, #tpu.memory_space<smem>>
    %c0_3 = arith.constant 0 : index
    %c3 = arith.constant 3 : index
    %3 = memref.load %arg2[%c0_3, %c3] : memref<6x8xf32, #tpu.memory_space<smem>>
    %c0_4 = arith.constant 0 : index
    %c4 = arith.constant 4 : index
    %4 = memref.load %arg2[%c0_4, %c4] : memref<6x8xf32, #tpu.memory_space<smem>>
    %c0_5 = arith.constant 0 : index
    %c5 = arith.constant 5 : index
    %5 = memref.load %arg2[%c0_5, %c5] : memref<6x8xf32, #tpu.memory_space<smem>>
    %c0_6 = arith.constant 0 : index
    %c6 = arith.constant 6 : index
    %6 = memref.load %arg2[%c0_6, %c6] : memref<6x8xf32, #tpu.memory_space<smem>>
    %c0_7 = arith.constant 0 : index
    %c7 = arith.constant 7 : index
    %7 = memref.load %arg2[%c0_7, %c7] : memref<6x8xf32, #tpu.memory_space<smem>>
    %c1_8 = arith.constant 1 : index
    %c0_9 = arith.constant 0 : index
    %8 = memref.load %arg2[%c1_8, %c0_9] : memref<6x8xf32, #tpu.memory_space<smem>>
    %c1_10 = arith.constant 1 : index
    %c1_11 = arith.constant 1 : index
    %9 = memref.load %arg2[%c1_10, %c1_11] : memref<6x8xf32, #tpu.memory_space<smem>>
    %c1_12 = arith.constant 1 : index
    %c2_13 = arith.constant 2 : index
    %10 = memref.load %arg2[%c1_12, %c2_13] : memref<6x8xf32, #tpu.memory_space<smem>>
    %c1_14 = arith.constant 1 : index
    %c3_15 = arith.constant 3 : index
    %11 = memref.load %arg2[%c1_14, %c3_15] : memref<6x8xf32, #tpu.memory_space<smem>>
    %c1_16 = arith.constant 1 : index
    %c4_17 = arith.constant 4 : index
    %12 = memref.load %arg2[%c1_16, %c4_17] : memref<6x8xf32, #tpu.memory_space<smem>>
    %c1_18 = arith.constant 1 : index
    %c5_19 = arith.constant 5 : index
    %13 = memref.load %arg2[%c1_18, %c5_19] : memref<6x8xf32, #tpu.memory_space<smem>>
    %c1_20 = arith.constant 1 : index
    %c6_21 = arith.constant 6 : index
    %14 = memref.load %arg2[%c1_20, %c6_21] : memref<6x8xf32, #tpu.memory_space<smem>>
    %c1_22 = arith.constant 1 : index
    %c7_23 = arith.constant 7 : index
    %15 = memref.load %arg2[%c1_22, %c7_23] : memref<6x8xf32, #tpu.memory_space<smem>>
    %c2_24 = arith.constant 2 : index
    %c0_25 = arith.constant 0 : index
    %16 = memref.load %arg2[%c2_24, %c0_25] : memref<6x8xf32, #tpu.memory_space<smem>>
    %c2_26 = arith.constant 2 : index
    %c1_27 = arith.constant 1 : index
    %17 = memref.load %arg2[%c2_26, %c1_27] : memref<6x8xf32, #tpu.memory_space<smem>>
    %c2_28 = arith.constant 2 : index
    %c2_29 = arith.constant 2 : index
    %18 = memref.load %arg2[%c2_28, %c2_29] : memref<6x8xf32, #tpu.memory_space<smem>>
    %c2_30 = arith.constant 2 : index
    %c3_31 = arith.constant 3 : index
    %19 = memref.load %arg2[%c2_30, %c3_31] : memref<6x8xf32, #tpu.memory_space<smem>>
    %c2_32 = arith.constant 2 : index
    %c4_33 = arith.constant 4 : index
    %20 = memref.load %arg2[%c2_32, %c4_33] : memref<6x8xf32, #tpu.memory_space<smem>>
    %c2_34 = arith.constant 2 : index
    %c5_35 = arith.constant 5 : index
    %21 = memref.load %arg2[%c2_34, %c5_35] : memref<6x8xf32, #tpu.memory_space<smem>>
    %c2_36 = arith.constant 2 : index
    %c6_37 = arith.constant 6 : index
    %22 = memref.load %arg2[%c2_36, %c6_37] : memref<6x8xf32, #tpu.memory_space<smem>>
    %c2_38 = arith.constant 2 : index
    %c7_39 = arith.constant 7 : index
    %23 = memref.load %arg2[%c2_38, %c7_39] : memref<6x8xf32, #tpu.memory_space<smem>>
    %c3_40 = arith.constant 3 : index
    %c0_41 = arith.constant 0 : index
    %24 = memref.load %arg2[%c3_40, %c0_41] : memref<6x8xf32, #tpu.memory_space<smem>>
    %c3_42 = arith.constant 3 : index
    %c1_43 = arith.constant 1 : index
    %25 = memref.load %arg2[%c3_42, %c1_43] : memref<6x8xf32, #tpu.memory_space<smem>>
    %c3_44 = arith.constant 3 : index
    %c2_45 = arith.constant 2 : index
    %26 = memref.load %arg2[%c3_44, %c2_45] : memref<6x8xf32, #tpu.memory_space<smem>>
    %c3_46 = arith.constant 3 : index
    %c3_47 = arith.constant 3 : index
    %27 = memref.load %arg2[%c3_46, %c3_47] : memref<6x8xf32, #tpu.memory_space<smem>>
    %c3_48 = arith.constant 3 : index
    %c4_49 = arith.constant 4 : index
    %28 = memref.load %arg2[%c3_48, %c4_49] : memref<6x8xf32, #tpu.memory_space<smem>>
    %c3_50 = arith.constant 3 : index
    %c5_51 = arith.constant 5 : index
    %29 = memref.load %arg2[%c3_50, %c5_51] : memref<6x8xf32, #tpu.memory_space<smem>>
    %c3_52 = arith.constant 3 : index
    %c6_53 = arith.constant 6 : index
    %30 = memref.load %arg2[%c3_52, %c6_53] : memref<6x8xf32, #tpu.memory_space<smem>>
    %c3_54 = arith.constant 3 : index
    %c7_55 = arith.constant 7 : index
    %31 = memref.load %arg2[%c3_54, %c7_55] : memref<6x8xf32, #tpu.memory_space<smem>>
    %c4_56 = arith.constant 4 : index
    %c0_57 = arith.constant 0 : index
    %32 = memref.load %arg2[%c4_56, %c0_57] : memref<6x8xf32, #tpu.memory_space<smem>>
    %c4_58 = arith.constant 4 : index
    %c1_59 = arith.constant 1 : index
    %33 = memref.load %arg2[%c4_58, %c1_59] : memref<6x8xf32, #tpu.memory_space<smem>>
    %c4_60 = arith.constant 4 : index
    %c2_61 = arith.constant 2 : index
    %34 = memref.load %arg2[%c4_60, %c2_61] : memref<6x8xf32, #tpu.memory_space<smem>>
    %c4_62 = arith.constant 4 : index
    %c3_63 = arith.constant 3 : index
    %35 = memref.load %arg2[%c4_62, %c3_63] : memref<6x8xf32, #tpu.memory_space<smem>>
    %c4_64 = arith.constant 4 : index
    %c4_65 = arith.constant 4 : index
    %36 = memref.load %arg2[%c4_64, %c4_65] : memref<6x8xf32, #tpu.memory_space<smem>>
    %c4_66 = arith.constant 4 : index
    %c5_67 = arith.constant 5 : index
    %37 = memref.load %arg2[%c4_66, %c5_67] : memref<6x8xf32, #tpu.memory_space<smem>>
    %c4_68 = arith.constant 4 : index
    %c6_69 = arith.constant 6 : index
    %38 = memref.load %arg2[%c4_68, %c6_69] : memref<6x8xf32, #tpu.memory_space<smem>>
    %c4_70 = arith.constant 4 : index
    %c7_71 = arith.constant 7 : index
    %39 = memref.load %arg2[%c4_70, %c7_71] : memref<6x8xf32, #tpu.memory_space<smem>>
    %c5_72 = arith.constant 5 : index
    %c0_73 = arith.constant 0 : index
    %40 = memref.load %arg2[%c5_72, %c0_73] : memref<6x8xf32, #tpu.memory_space<smem>>
    %c5_74 = arith.constant 5 : index
    %c1_75 = arith.constant 1 : index
    %41 = memref.load %arg2[%c5_74, %c1_75] : memref<6x8xf32, #tpu.memory_space<smem>>
    %c5_76 = arith.constant 5 : index
    %c2_77 = arith.constant 2 : index
    %42 = memref.load %arg2[%c5_76, %c2_77] : memref<6x8xf32, #tpu.memory_space<smem>>
    %c5_78 = arith.constant 5 : index
    %c3_79 = arith.constant 3 : index
    %43 = memref.load %arg2[%c5_78, %c3_79] : memref<6x8xf32, #tpu.memory_space<smem>>
    %c5_80 = arith.constant 5 : index
    %c4_81 = arith.constant 4 : index
    %44 = memref.load %arg2[%c5_80, %c4_81] : memref<6x8xf32, #tpu.memory_space<smem>>
    %c5_82 = arith.constant 5 : index
    %c5_83 = arith.constant 5 : index
    %45 = memref.load %arg2[%c5_82, %c5_83] : memref<6x8xf32, #tpu.memory_space<smem>>
    %c5_84 = arith.constant 5 : index
    %c6_85 = arith.constant 6 : index
    %46 = memref.load %arg2[%c5_84, %c6_85] : memref<6x8xf32, #tpu.memory_space<smem>>
    %c5_86 = arith.constant 5 : index
    %c7_87 = arith.constant 7 : index
    %47 = memref.load %arg2[%c5_86, %c7_87] : memref<6x8xf32, #tpu.memory_space<smem>>
    %c0_88 = arith.constant 0 : index
    %c0_89 = arith.constant 0 : index
    %48 = memref.load %arg3[%c0_88, %c0_89] : memref<1x8xf32, #tpu.memory_space<smem>>
    %c0_90 = arith.constant 0 : index
    %c1_91 = arith.constant 1 : index
    %49 = memref.load %arg3[%c0_90, %c1_91] : memref<1x8xf32, #tpu.memory_space<smem>>
    %c0_92 = arith.constant 0 : index
    %c2_93 = arith.constant 2 : index
    %50 = memref.load %arg3[%c0_92, %c2_93] : memref<1x8xf32, #tpu.memory_space<smem>>
    %c0_94 = arith.constant 0 : index
    %c3_95 = arith.constant 3 : index
    %51 = memref.load %arg3[%c0_94, %c3_95] : memref<1x8xf32, #tpu.memory_space<smem>>
    %c0_96 = arith.constant 0 : index
    %c4_97 = arith.constant 4 : index
    %52 = memref.load %arg3[%c0_96, %c4_97] : memref<1x8xf32, #tpu.memory_space<smem>>
    %c0_98 = arith.constant 0 : index
    %c5_99 = arith.constant 5 : index
    %53 = memref.load %arg3[%c0_98, %c5_99] : memref<1x8xf32, #tpu.memory_space<smem>>
    %c0_100 = arith.constant 0 : index
    %c6_101 = arith.constant 6 : index
    %54 = memref.load %arg3[%c0_100, %c6_101] : memref<1x8xf32, #tpu.memory_space<smem>>
    %c0_102 = arith.constant 0 : index
    %c7_103 = arith.constant 7 : index
    %55 = memref.load %arg3[%c0_102, %c7_103] : memref<1x8xf32, #tpu.memory_space<smem>>
    %c0_104 = arith.constant 0 : index
    %c0_105 = arith.constant 0 : index
    %56 = memref.load %arg4[%c0_104, %c0_105] : memref<8x1xf32, #tpu.memory_space<smem>>
    %c1_106 = arith.constant 1 : index
    %c0_107 = arith.constant 0 : index
    %57 = memref.load %arg4[%c1_106, %c0_107] : memref<8x1xf32, #tpu.memory_space<smem>>
    %c2_108 = arith.constant 2 : index
    %c0_109 = arith.constant 0 : index
    %58 = memref.load %arg4[%c2_108, %c0_109] : memref<8x1xf32, #tpu.memory_space<smem>>
    %c3_110 = arith.constant 3 : index
    %c0_111 = arith.constant 0 : index
    %59 = memref.load %arg4[%c3_110, %c0_111] : memref<8x1xf32, #tpu.memory_space<smem>>
    %c4_112 = arith.constant 4 : index
    %c0_113 = arith.constant 0 : index
    %60 = memref.load %arg4[%c4_112, %c0_113] : memref<8x1xf32, #tpu.memory_space<smem>>
    %c5_114 = arith.constant 5 : index
    %c0_115 = arith.constant 0 : index
    %61 = memref.load %arg4[%c5_114, %c0_115] : memref<8x1xf32, #tpu.memory_space<smem>>
    %c6_116 = arith.constant 6 : index
    %c0_117 = arith.constant 0 : index
    %62 = memref.load %arg4[%c6_116, %c0_117] : memref<8x1xf32, #tpu.memory_space<smem>>
    %c7_118 = arith.constant 7 : index
    %c0_119 = arith.constant 0 : index
    %63 = memref.load %arg4[%c7_118, %c0_119] : memref<8x1xf32, #tpu.memory_space<smem>>
    %c0_120 = arith.constant 0 : index
    %c0_121 = arith.constant 0 : index
    %64 = memref.load %arg5[%c0_120, %c0_121] : memref<1x1xf32, #tpu.memory_space<smem>>
    %c0_i32 = arith.constant 0 : i32
    %c8_i32 = arith.constant 8 : i32
    %65 = arith.muli %c0_i32, %c8_i32 : i32
    %66 = tpu.assume_multiple %65, 8 : i32
    %c0_122 = arith.constant 0 : index
    %67 = arith.index_cast %66 : i32 to index
    %c0_123 = arith.constant 0 : index
    %68 = vector.load %arg1[%c0_122, %67, %c0_123] : memref<2x8x512xf32, #tpu.memory_space<vmem>>, vector<1x8x512xf32>
    %69 = vector.shape_cast %68 : vector<1x8x512xf32> to vector<8x512xf32>
    %c1_124 = arith.constant 1 : index
    %70 = arith.index_cast %66 : i32 to index
    %c0_125 = arith.constant 0 : index
    %71 = vector.load %arg1[%c1_124, %70, %c0_125] : memref<2x8x512xf32, #tpu.memory_space<vmem>>, vector<1x8x512xf32>
    %72 = vector.shape_cast %71 : vector<1x8x512xf32> to vector<8x512xf32>
    %73 = arith.mulf %69, %69 : vector<8x512xf32>
    %74 = arith.mulf %72, %72 : vector<8x512xf32>
    %75 = math.sin %69 : vector<8x512xf32>
    %76 = math.sin %72 : vector<8x512xf32>
    %77 = vector.broadcast %64 : f32 to vector<8x512xf32>
    %78 = vector.broadcast %0 : f32 to vector<8x512xf32>
    %79 = arith.mulf %69, %78 : vector<8x512xf32>
    %80 = vector.broadcast %8 : f32 to vector<8x512xf32>
    %81 = arith.mulf %72, %80 : vector<8x512xf32>
    %82 = arith.addf %79, %81 : vector<8x512xf32>
    %83 = vector.broadcast %16 : f32 to vector<8x512xf32>
    %84 = arith.mulf %73, %83 : vector<8x512xf32>
    %85 = arith.addf %82, %84 : vector<8x512xf32>
    %86 = vector.broadcast %24 : f32 to vector<8x512xf32>
    %87 = arith.mulf %74, %86 : vector<8x512xf32>
    %88 = arith.addf %85, %87 : vector<8x512xf32>
    %89 = vector.broadcast %32 : f32 to vector<8x512xf32>
    %90 = arith.mulf %75, %89 : vector<8x512xf32>
    %91 = arith.addf %88, %90 : vector<8x512xf32>
    %92 = vector.broadcast %40 : f32 to vector<8x512xf32>
    %93 = arith.mulf %76, %92 : vector<8x512xf32>
    %94 = arith.addf %91, %93 : vector<8x512xf32>
    %95 = vector.broadcast %48 : f32 to vector<8x512xf32>
    %96 = arith.addf %94, %95 : vector<8x512xf32>
    %cst = arith.constant 0.000000e+00 : f32
    %97 = vector.broadcast %cst : f32 to vector<8x512xf32>
    %98 = arith.maximumf %96, %97 : vector<8x512xf32>
    %99 = vector.broadcast %56 : f32 to vector<8x512xf32>
    %100 = arith.mulf %98, %99 : vector<8x512xf32>
    %101 = arith.addf %77, %100 : vector<8x512xf32>
    %102 = vector.broadcast %1 : f32 to vector<8x512xf32>
    %103 = arith.mulf %69, %102 : vector<8x512xf32>
    %104 = vector.broadcast %9 : f32 to vector<8x512xf32>
    %105 = arith.mulf %72, %104 : vector<8x512xf32>
    %106 = arith.addf %103, %105 : vector<8x512xf32>
    %107 = vector.broadcast %17 : f32 to vector<8x512xf32>
    %108 = arith.mulf %73, %107 : vector<8x512xf32>
    %109 = arith.addf %106, %108 : vector<8x512xf32>
    %110 = vector.broadcast %25 : f32 to vector<8x512xf32>
    %111 = arith.mulf %74, %110 : vector<8x512xf32>
    %112 = arith.addf %109, %111 : vector<8x512xf32>
    %113 = vector.broadcast %33 : f32 to vector<8x512xf32>
    %114 = arith.mulf %75, %113 : vector<8x512xf32>
    %115 = arith.addf %112, %114 : vector<8x512xf32>
    %116 = vector.broadcast %41 : f32 to vector<8x512xf32>
    %117 = arith.mulf %76, %116 : vector<8x512xf32>
    %118 = arith.addf %115, %117 : vector<8x512xf32>
    %119 = vector.broadcast %49 : f32 to vector<8x512xf32>
    %120 = arith.addf %118, %119 : vector<8x512xf32>
    %cst_126 = arith.constant 0.000000e+00 : f32
    %121 = vector.broadcast %cst_126 : f32 to vector<8x512xf32>
    %122 = arith.maximumf %120, %121 : vector<8x512xf32>
    %123 = vector.broadcast %57 : f32 to vector<8x512xf32>
    %124 = arith.mulf %122, %123 : vector<8x512xf32>
    %125 = arith.addf %101, %124 : vector<8x512xf32>
    %126 = vector.broadcast %2 : f32 to vector<8x512xf32>
    %127 = arith.mulf %69, %126 : vector<8x512xf32>
    %128 = vector.broadcast %10 : f32 to vector<8x512xf32>
    %129 = arith.mulf %72, %128 : vector<8x512xf32>
    %130 = arith.addf %127, %129 : vector<8x512xf32>
    %131 = vector.broadcast %18 : f32 to vector<8x512xf32>
    %132 = arith.mulf %73, %131 : vector<8x512xf32>
    %133 = arith.addf %130, %132 : vector<8x512xf32>
    %134 = vector.broadcast %26 : f32 to vector<8x512xf32>
    %135 = arith.mulf %74, %134 : vector<8x512xf32>
    %136 = arith.addf %133, %135 : vector<8x512xf32>
    %137 = vector.broadcast %34 : f32 to vector<8x512xf32>
    %138 = arith.mulf %75, %137 : vector<8x512xf32>
    %139 = arith.addf %136, %138 : vector<8x512xf32>
    %140 = vector.broadcast %42 : f32 to vector<8x512xf32>
    %141 = arith.mulf %76, %140 : vector<8x512xf32>
    %142 = arith.addf %139, %141 : vector<8x512xf32>
    %143 = vector.broadcast %50 : f32 to vector<8x512xf32>
    %144 = arith.addf %142, %143 : vector<8x512xf32>
    %cst_127 = arith.constant 0.000000e+00 : f32
    %145 = vector.broadcast %cst_127 : f32 to vector<8x512xf32>
    %146 = arith.maximumf %144, %145 : vector<8x512xf32>
    %147 = vector.broadcast %58 : f32 to vector<8x512xf32>
    %148 = arith.mulf %146, %147 : vector<8x512xf32>
    %149 = arith.addf %125, %148 : vector<8x512xf32>
    %150 = vector.broadcast %3 : f32 to vector<8x512xf32>
    %151 = arith.mulf %69, %150 : vector<8x512xf32>
    %152 = vector.broadcast %11 : f32 to vector<8x512xf32>
    %153 = arith.mulf %72, %152 : vector<8x512xf32>
    %154 = arith.addf %151, %153 : vector<8x512xf32>
    %155 = vector.broadcast %19 : f32 to vector<8x512xf32>
    %156 = arith.mulf %73, %155 : vector<8x512xf32>
    %157 = arith.addf %154, %156 : vector<8x512xf32>
    %158 = vector.broadcast %27 : f32 to vector<8x512xf32>
    %159 = arith.mulf %74, %158 : vector<8x512xf32>
    %160 = arith.addf %157, %159 : vector<8x512xf32>
    %161 = vector.broadcast %35 : f32 to vector<8x512xf32>
    %162 = arith.mulf %75, %161 : vector<8x512xf32>
    %163 = arith.addf %160, %162 : vector<8x512xf32>
    %164 = vector.broadcast %43 : f32 to vector<8x512xf32>
    %165 = arith.mulf %76, %164 : vector<8x512xf32>
    %166 = arith.addf %163, %165 : vector<8x512xf32>
    %167 = vector.broadcast %51 : f32 to vector<8x512xf32>
    %168 = arith.addf %166, %167 : vector<8x512xf32>
    %cst_128 = arith.constant 0.000000e+00 : f32
    %169 = vector.broadcast %cst_128 : f32 to vector<8x512xf32>
    %170 = arith.maximumf %168, %169 : vector<8x512xf32>
    %171 = vector.broadcast %59 : f32 to vector<8x512xf32>
    %172 = arith.mulf %170, %171 : vector<8x512xf32>
    %173 = arith.addf %149, %172 : vector<8x512xf32>
    %174 = vector.broadcast %4 : f32 to vector<8x512xf32>
    %175 = arith.mulf %69, %174 : vector<8x512xf32>
    %176 = vector.broadcast %12 : f32 to vector<8x512xf32>
    %177 = arith.mulf %72, %176 : vector<8x512xf32>
    %178 = arith.addf %175, %177 : vector<8x512xf32>
    %179 = vector.broadcast %20 : f32 to vector<8x512xf32>
    %180 = arith.mulf %73, %179 : vector<8x512xf32>
    %181 = arith.addf %178, %180 : vector<8x512xf32>
    %182 = vector.broadcast %28 : f32 to vector<8x512xf32>
    %183 = arith.mulf %74, %182 : vector<8x512xf32>
    %184 = arith.addf %181, %183 : vector<8x512xf32>
    %185 = vector.broadcast %36 : f32 to vector<8x512xf32>
    %186 = arith.mulf %75, %185 : vector<8x512xf32>
    %187 = arith.addf %184, %186 : vector<8x512xf32>
    %188 = vector.broadcast %44 : f32 to vector<8x512xf32>
    %189 = arith.mulf %76, %188 : vector<8x512xf32>
    %190 = arith.addf %187, %189 : vector<8x512xf32>
    %191 = vector.broadcast %52 : f32 to vector<8x512xf32>
    %192 = arith.addf %190, %191 : vector<8x512xf32>
    %cst_129 = arith.constant 0.000000e+00 : f32
    %193 = vector.broadcast %cst_129 : f32 to vector<8x512xf32>
    %194 = arith.maximumf %192, %193 : vector<8x512xf32>
    %195 = vector.broadcast %60 : f32 to vector<8x512xf32>
    %196 = arith.mulf %194, %195 : vector<8x512xf32>
    %197 = arith.addf %173, %196 : vector<8x512xf32>
    %198 = vector.broadcast %5 : f32 to vector<8x512xf32>
    %199 = arith.mulf %69, %198 : vector<8x512xf32>
    %200 = vector.broadcast %13 : f32 to vector<8x512xf32>
    %201 = arith.mulf %72, %200 : vector<8x512xf32>
    %202 = arith.addf %199, %201 : vector<8x512xf32>
    %203 = vector.broadcast %21 : f32 to vector<8x512xf32>
    %204 = arith.mulf %73, %203 : vector<8x512xf32>
    %205 = arith.addf %202, %204 : vector<8x512xf32>
    %206 = vector.broadcast %29 : f32 to vector<8x512xf32>
    %207 = arith.mulf %74, %206 : vector<8x512xf32>
    %208 = arith.addf %205, %207 : vector<8x512xf32>
    %209 = vector.broadcast %37 : f32 to vector<8x512xf32>
    %210 = arith.mulf %75, %209 : vector<8x512xf32>
    %211 = arith.addf %208, %210 : vector<8x512xf32>
    %212 = vector.broadcast %45 : f32 to vector<8x512xf32>
    %213 = arith.mulf %76, %212 : vector<8x512xf32>
    %214 = arith.addf %211, %213 : vector<8x512xf32>
    %215 = vector.broadcast %53 : f32 to vector<8x512xf32>
    %216 = arith.addf %214, %215 : vector<8x512xf32>
    %cst_130 = arith.constant 0.000000e+00 : f32
    %217 = vector.broadcast %cst_130 : f32 to vector<8x512xf32>
    %218 = arith.maximumf %216, %217 : vector<8x512xf32>
    %219 = vector.broadcast %61 : f32 to vector<8x512xf32>
    %220 = arith.mulf %218, %219 : vector<8x512xf32>
    %221 = arith.addf %197, %220 : vector<8x512xf32>
    %222 = vector.broadcast %6 : f32 to vector<8x512xf32>
    %223 = arith.mulf %69, %222 : vector<8x512xf32>
    %224 = vector.broadcast %14 : f32 to vector<8x512xf32>
    %225 = arith.mulf %72, %224 : vector<8x512xf32>
    %226 = arith.addf %223, %225 : vector<8x512xf32>
    %227 = vector.broadcast %22 : f32 to vector<8x512xf32>
    %228 = arith.mulf %73, %227 : vector<8x512xf32>
    %229 = arith.addf %226, %228 : vector<8x512xf32>
    %230 = vector.broadcast %30 : f32 to vector<8x512xf32>
    %231 = arith.mulf %74, %230 : vector<8x512xf32>
    %232 = arith.addf %229, %231 : vector<8x512xf32>
    %233 = vector.broadcast %38 : f32 to vector<8x512xf32>
    %234 = arith.mulf %75, %233 : vector<8x512xf32>
    %235 = arith.addf %232, %234 : vector<8x512xf32>
    %236 = vector.broadcast %46 : f32 to vector<8x512xf32>
    %237 = arith.mulf %76, %236 : vector<8x512xf32>
    %238 = arith.addf %235, %237 : vector<8x512xf32>
    %239 = vector.broadcast %54 : f32 to vector<8x512xf32>
    %240 = arith.addf %238, %239 : vector<8x512xf32>
    %cst_131 = arith.constant 0.000000e+00 : f32
    %241 = vector.broadcast %cst_131 : f32 to vector<8x512xf32>
    %242 = arith.maximumf %240, %241 : vector<8x512xf32>
    %243 = vector.broadcast %62 : f32 to vector<8x512xf32>
    %244 = arith.mulf %242, %243 : vector<8x512xf32>
    %245 = arith.addf %221, %244 : vector<8x512xf32>
    %246 = vector.broadcast %7 : f32 to vector<8x512xf32>
    %247 = arith.mulf %69, %246 : vector<8x512xf32>
    %248 = vector.broadcast %15 : f32 to vector<8x512xf32>
    %249 = arith.mulf %72, %248 : vector<8x512xf32>
    %250 = arith.addf %247, %249 : vector<8x512xf32>
    %251 = vector.broadcast %23 : f32 to vector<8x512xf32>
    %252 = arith.mulf %73, %251 : vector<8x512xf32>
    %253 = arith.addf %250, %252 : vector<8x512xf32>
    %254 = vector.broadcast %31 : f32 to vector<8x512xf32>
    %255 = arith.mulf %74, %254 : vector<8x512xf32>
    %256 = arith.addf %253, %255 : vector<8x512xf32>
    %257 = vector.broadcast %39 : f32 to vector<8x512xf32>
    %258 = arith.mulf %75, %257 : vector<8x512xf32>
    %259 = arith.addf %256, %258 : vector<8x512xf32>
    %260 = vector.broadcast %47 : f32 to vector<8x512xf32>
    %261 = arith.mulf %76, %260 : vector<8x512xf32>
    %262 = arith.addf %259, %261 : vector<8x512xf32>
    %263 = vector.broadcast %55 : f32 to vector<8x512xf32>
    %264 = arith.addf %262, %263 : vector<8x512xf32>
    %cst_132 = arith.constant 0.000000e+00 : f32
    %265 = vector.broadcast %cst_132 : f32 to vector<8x512xf32>
    %266 = arith.maximumf %264, %265 : vector<8x512xf32>
    %267 = vector.broadcast %63 : f32 to vector<8x512xf32>
    %268 = arith.mulf %266, %267 : vector<8x512xf32>
    %269 = arith.addf %245, %268 : vector<8x512xf32>
    %270 = arith.index_cast %66 : i32 to index
    %c0_133 = arith.constant 0 : index
    %271 = vector.load %arg6[%270, %c0_133] : memref<8x512xf32, #tpu.memory_space<vmem>>, vector<8x512xf32>
    tpu.vector_store %arg6[%270, %c0_133], %269 {strides = array<i32>} : memref<8x512xf32, #tpu.memory_space<vmem>>, vector<8x512xf32>,
    %c1_i32 = arith.constant 1 : i32
    return
  }
  func.func @transform_0(%arg0: i32) -> (i32, i32, i32) {
    %c0_i32 = arith.constant 0 : i32
    %c0_i32_0 = arith.constant 0 : i32
    %c0_i32_1 = arith.constant 0 : i32
    return %c0_i32, %arg0, %c0_i32_0 : i32, i32, i32
  }
  func.func @transform_1(%arg0: i32) -> (i32, i32) {
    %c0_i32 = arith.constant 0 : i32
    %c0_i32_0 = arith.constant 0 : i32
    %c0_i32_1 = arith.constant 0 : i32
    return %c0_i32, %c0_i32_0 : i32, i32
  }
  func.func @transform_2(%arg0: i32) -> (i32, i32) {
    %c0_i32 = arith.constant 0 : i32
    %c0_i32_0 = arith.constant 0 : i32
    %c0_i32_1 = arith.constant 0 : i32
    return %c0_i32, %c0_i32_0 : i32, i32
  }
  func.func @transform_3(%arg0: i32) -> (i32, i32) {
    %c0_i32 = arith.constant 0 : i32
    %c0_i32_0 = arith.constant 0 : i32
    %c0_i32_1 = arith.constant 0 : i32
    return %c0_i32, %c0_i32_0 : i32, i32
  }
  func.func @transform_4(%arg0: i32) -> (i32, i32) {
    %c0_i32 = arith.constant 0 : i32
    %c0_i32_0 = arith.constant 0 : i32
    %c0_i32_1 = arith.constant 0 : i32
    return %c0_i32, %c0_i32_0 : i32, i32
  }
  func.func @transform_5(%arg0: i32) -> (i32, i32) {
    %c0_i32 = arith.constant 0 : i32
    %c0_i32_0 = arith.constant 0 : i32
    return %arg0, %c0_i32 : i32, i32
  }
}

</mosaic_0001>

<bundles_post_ra>
// kernel: tpu_custom_call.1
= control target key start
LH: loop header
LB: loop body
LE: loop exit
PB: predicated region body
PF: predicated region fallthrough
CT: control target
= control target key end

     0   :  { %11 = vsyncpa [#allocation4], 0  ;;  %s3237_s0 = inlined_call_operand.hbm [shape: f32[2,8,512], index: 0, kind: input, shape index: {}]   ;;  %s3238_s1 = inlined_call_operand.vmem [shape: f32[6,8], index: 1, kind: input, shape index: {}]   ;;  %s3239_s2 = inlined_call_operand.vmem [shape: f32[1,8], index: 2, kind: input, shape index: {}]   ;;  %s3240_s3 = inlined_call_operand.vmem [shape: f32[8,1], index: 3, kind: input, shape index: {}]   ;;  %s3241_s4 = inlined_call_operand.<no memory space> [shape: f32[1,1], index: 4, kind: input, shape index: {}]   ;;  %s3242_s5 = inlined_call_operand.hbm [shape: f32[8,512], index: 5, kind: output, shape index: {}]  }
   0x1   :  { %12 = vsyncpa [#allocation6], 0 }
   0x2   :  { %13 = vsyncpa [#allocation9], 0  ;;  %s43_s20 = sshll.u32 %s3239_s2, 4  ;;  %s44_s20 = int_to_ptr.vmem [resolvable:$true] %s43_s20 }
   0x3   :  { %14 = vsyncpa [#allocation5], 0  ;;  %s1744_s21 = scalar_lea.vmem %s44_s20, 16  ;;  %p1749_p1 = scmp.lt.s32.totalorder %s44_s20, %s44_s20 }
   0x4   :  { %p1745_p0 = scmp.ne.s32.totalorder %s44_s20, %s1744_s21  ;;  %p1750_p2 = scmp.lt.s32.totalorder %s1744_s21, %s1744_s21 }
   0x6   :  { %p1751_p3 = por %p1750_p2, %p1749_p1 }
   0x8   :  { %p1752_p4 = pnand %p1751_p3, %p1745_p0 }
   0xa   :  { %1755 = shalt.err (!%p1752_p4)
}
   0xb   :  { %s1828_s22 = smov [#allocation8]   ;;  %s1829_s23 = smov [#allocation3]  }
   0xc   :  { %46 = dma.vmem_to_smem %s44_s20, 16, %s1828_s22, [#allocation9]  }
   0xd   :  { %s20_s24 = sshll.u32 %s1829_s23, 4  ;;  %s21_s24 = int_to_ptr.vmem [resolvable:$true] %s20_s24 }
   0xe   :  { %s1764_s25 = scalar_lea.vmem %s21_s24, 1024  ;;  %p1769_p6 = scmp.lt.s32.totalorder %s21_s24, %s21_s24 }
   0xf   :  { %p1765_p5 = scmp.ne.s32.totalorder %s21_s24, %s1764_s25  ;;  %p1770_p7 = scmp.lt.s32.totalorder %s1764_s25, %s1764_s25 }
  0x11   :  { %p1771_p8 = por %p1770_p7, %p1769_p6 }
  0x13   :  { %p1772_p9 = pnand %p1771_p8, %p1765_p5 }
  0x15   :  { %1775 = shalt.err (!%p1772_p9)
}
  0x16   :  { %s1830_s2 = smov 512   ;;  %s1831_s26 = smov 32  }
  0x17   :  { %26 = dma.hbm_to_vmem [thread:$0]  %s3237_s0, 1024, %s21_s24, [#allocation4], %s1830_s2, %s1830_s2, %s1831_s26  }
  0x18   :  { %s33_s6 = sshll.u32 %s3238_s1, 4  ;;  %s53_s9 = sshll.u32 %s3240_s3, 4  ;;  %s34_s6 = int_to_ptr.vmem [resolvable:$true] %s33_s6  ;;  %s54_s9 = int_to_ptr.vmem [resolvable:$true] %s53_s9 }
  0x19   :  { %s1776_s10 = scalar_lea.vmem %s34_s6, 128  ;;  %p1781_p11 = scmp.lt.s32.totalorder %s34_s6, %s34_s6 }
  0x1a   :  { %p1777_p10 = scmp.ne.s32.totalorder %s34_s6, %s1776_s10  ;;  %p1782_p12 = scmp.lt.s32.totalorder %s1776_s10, %s1776_s10 }
  0x1c   :  { %p1783_p13 = por %p1782_p12, %p1781_p11 }
  0x1e   :  { %p1784_p0 = pnand %p1783_p13, %p1777_p10 }
  0x20   :  { %1787 = shalt.err (!%p1784_p0)
}
  0x21   :  { %s1832_s11 = smov [#allocation7]   ;;  %s1788_s0 = scalar_lea.vmem %s54_s9, 128 }
  0x22   :  { %36 = dma.vmem_to_smem %s34_s6, 128, %s1832_s11, [#allocation6]  }
  0x23   :  { %p1789_p1 = scmp.ne.s32.totalorder %s54_s9, %s1788_s0  ;;  %p1793_p2 = scmp.lt.s32.totalorder %s54_s9, %s54_s9 }
  0x24   :  { %p1794_p3 = scmp.lt.s32.totalorder %s1788_s0, %s1788_s0 }
  0x26   :  { %p1795_p4 = por %p1794_p3, %p1793_p2 }
  0x28   :  { %p1796_p5 = pnand %p1795_p4, %p1789_p1 }
  0x2a   :  { %1799 = shalt.err (!%p1796_p5)
}
  0x2b   :  { %s1833_s1 = smov [#allocation10]  }
  0x2c   :  { %56 = dma.vmem_to_smem %s54_s9, 128, %s1833_s1, [#allocation9]  }
  0x2d   :  { %1820 = dma.done.wait [#allocation4], 1024  }
  0x2e   :  { %1821 = vsyncadd [#allocation4], 4294966272 }
  0x2f   :  { %1822 = dma.done.wait [#allocation6], 128  }
  0x30   :  { %1823 = vsyncadd [#allocation6], 4294967168 }
  0x31   :  { %1824 = dma.done.wait [#allocation9], 144  }
  0x32   :  { %1825 = vsyncadd [#allocation9], 4294967152 }
  0x33   :  { %71 = sfence }
  0x34   :  { %v1883_v0 = vld [vmem:[#allocation3] sm:$0xff]  ;;  %v1886_v2 = vld [vmem:[#allocation3 + $0x8] sm:$0xff]  ;;  %v1893_v12 = vld [vmem:[#allocation3 + $0x10] sm:$0xff]  ;;  %v1834_v22 = vmov 683565275   ;;  %s2511_s3 = sld [smem:[#allocation7]] }
  0x35   :  { %v159_v1 = vand.u32 2147483647, %v1883_v0  ;;  %v162_v3 = vand.u32 2139095040, %v1883_v0  ;;  %v266_v6 = vand.u32 2139095040, %v1886_v2  ;;  %v263_v9 = vand.u32 2147483647, %v1886_v2 }
  0x36   :  { %v370_v20 = vand.u32 2139095040, %v1893_v12  ;;  %v1835_v24 = vmov 2475754826   ;;  %v1836_v26 = vmov 2131351028   ;;  %s2520_s12 = sld [smem:[#allocation7 + $0x80]] }
  0x37   :  { %v163_v4 = vshrl.u32 %v162_v3, 23  ;;  %v166_v5 = vand.u32 8388607, %v159_v1  ;;  %v267_v11 = vshrl.u32 %v266_v6, 23  ;;  %v270_v15 = vand.u32 8388607, %v263_v9 }
  0x38   :  { %v1837_v28 = vmov 2102212464   ;;  %v1838_v30 = vmov 920167782   ;;  %v1839_v38 = vmov 1326507024  }
  0x39   :  { %v1621_v7 = vadd.s32 4294967169, %v163_v4  ;;  %v167_v10 = vor.u32 8388608, %v166_v5  ;;  %v1625_v14 = vadd.s32 4294967169, %v267_v11  ;;  %v271_v32 = vor.u32 8388608, %v270_v15  ;;  %s2555_s13 = sld [smem:[#allocation7 + $0x100]] }
  0x3a   :  { %v371_v53 = vshrl.u32 %v370_v20, 23  ;;  %s2569_s14 = sld [smem:[#allocation7 + $0x180]] }
  0x3b   :  { %v169_v8 = vadd.s32 1, %v1621_v7  ;;  %v1897_v18 = vshll.u32 %v167_v10, 8  ;;  %v273_v19 = vadd.s32 1, %v1625_v14  ;;  %v1914_v57 = vshll.u32 %v271_v32, 8  ;;  %s2628_s15 = sld [smem:[#allocation7 + $0x200]] }
  0x3c   :  { %s2640_s16 = sld [smem:[#allocation7 + $0x280]] }
  0x3d   :  { %vm170_vm0 = vcmp.gt.s32.totalorder %v169_v8, 0  ;;  %vm274_vm4 = vcmp.gt.s32.totalorder %v273_v19, 0  ;;  %s2654_s17 = sld [smem:[#allocation7 + $0x1]] }
  0x3e   :  { %v171_v13 = vsel %vm170_vm0, %v169_v8, 0  ;;  %v275_v45 = vsel %vm274_vm4, %v273_v19, 0  ;;  %s2657_s18 = sld [smem:[#allocation7 + $0x81]] }
  0x3f   :  { %v172_v16 = vshrl.u32 %v171_v13, 5  ;;  %v173_v17 = vand.u32 31, %v171_v13  ;;  %v276_v56 = vshrl.u32 %v275_v45, 5  ;;  %v277_v61 = vand.u32 31, %v275_v45  ;;  %s2664_s19 = sld [smem:[#allocation8]] }
  0x40   :  { %s2695_s22 = sld [smem:[#allocation7 + $0x101]] }
  0x41   :  { %v174_v21 = vsub.s32 32, %v173_v17  ;;  %v176_v23 = vshll.u32 %v1834_v22, %v173_v17  ;;  %v179_v25 = vshll.u32 %v1835_v24, %v173_v17  ;;  %v182_v27 = vshll.u32 %v1836_v26, %v173_v17  ;;  %s2710_s23 = sld [smem:[#allocation7 + $0x181]] }
  0x42   :  { %v185_v29 = vshll.u32 %v1837_v28, %v173_v17  ;;  %v188_v31 = vshll.u32 %v1838_v30, %v173_v17  ;;  %vm191_vm1 = vcmp.lt.s32.totalorder %v172_v16, 1  ;;  %vm192_vm2 = vcmp.lt.s32.totalorder %v172_v16, 2  ;;  %s2732_s24 = sld [smem:[#allocation7 + $0x201]] }
  0x43   :  { %v175_v33 = vshrl.u32 %v1834_v22, %v174_v21  ;;  %v177_v34 = vshrl.u32 %v1835_v24, %v174_v21  ;;  %v180_v35 = vshrl.u32 %v1836_v26, %v174_v21  ;;  %v183_v36 = vshrl.u32 %v1837_v28, %v174_v21  ;;  %s2749_s25 = sld [smem:[#allocation7 + $0x281]] }
  0x44   :  { %v186_v37 = vshrl.u32 %v1838_v30, %v174_v21  ;;  %v189_v39 = vshrl.u32 %v1839_v38, %v174_v21  ;;  %vm194_vm3 = vcmp.lt.s32.totalorder %v172_v16, 4  ;;  %vm193_vm5 = vcmp.lt.s32.totalorder %v172_v16, 3  ;;  %s2755_s2 = sld [smem:[#allocation8 + $0x1]] }
  0x45   :  { %v178_v40 = vor.u32 %v177_v34, %v176_v23  ;;  %v181_v41 = vor.u32 %v180_v35, %v179_v25  ;;  %v184_v42 = vor.u32 %v183_v36, %v182_v27  ;;  %v278_v5 = vsub.s32 32, %v277_v61  ;;  %s2759_s26 = sld [smem:[#allocation7 + $0x2]] }
  0x46   :  { %v187_v43 = vor.u32 %v186_v37, %v185_v29  ;;  %v190_v44 = vor.u32 %v189_v39, %v188_v31  ;;  %v280_v6 = vshll.u32 %v1834_v22, %v277_v61  ;;  %v283_v7 = vshll.u32 %v1835_v24, %v277_v61  ;;  %s2764_s27 = sld [smem:[#allocation7 + $0x82]] }
  0x47   :  { %v195_v46 = vsel %vm191_vm1, %v175_v33, %v178_v40  ;;  %v196_v47 = vsel %vm194_vm3, %v184_v42, 2102212464  ;;  %v199_v48 = vsel %vm191_vm1, %v178_v40, %v181_v41  ;;  %v203_v49 = vsel %vm191_vm1, %v181_v41, %v184_v42  ;;  %s2783_s28 = sld [smem:[#allocation7 + $0x102]] }
  0x48   :  { %v197_v50 = vsel %vm193_vm5, %v181_v41, %v196_v47  ;;  %v200_v51 = vsel %vm194_vm3, %v187_v43, 920167782  ;;  %v204_v52 = vsel %vm194_vm3, %v190_v44, 1326507024  ;;  %v286_v8 = vshll.u32 %v1836_v26, %v277_v61  ;;  %s2790_s29 = sld [smem:[#allocation10 + $0x80]] }
  0x49   :  { %v201_v54 = vsel %vm193_vm5, %v184_v42, %v200_v51  ;;  %v205_v55 = vsel %vm193_vm5, %v187_v43, %v204_v52  ;;  %v198_v58 = vsel %vm192_vm2, %v195_v46, %v197_v50  ;;  %v289_v11 = vshll.u32 %v1837_v28, %v277_v61  ;;  %s2804_s30 = sld [smem:[#allocation7 + $0x182]] }
  0x4a   :  { %v202_v59 = vsel %vm192_vm2, %v199_v48, %v201_v54  ;;  %v206_v60 = vsel %vm192_vm2, %v203_v49, %v205_v55  ;;  %v214_v10 = vmul.u32 %v1897_v18, %v198_v58  ;;  %v292_v13 = vshll.u32 %v1838_v30, %v277_v61  ;;  %s2807_s6 = sld [smem:[#allocation7 + $0x202]] }
  0x4b   :  { %v1920_v62 = vmul.u32.u64.low %v1897_v18, %v206_v60  ;;  %v1921_v63 = vmul.u32.u64.high %v1897_v18, %v206_v60, %v1920_v62  ;;  %v1924_v3 = vmul.u32.u64.low %v1897_v18, %v202_v59  ;;  %v1925_v4 = vmul.u32.u64.high %v1897_v18, %v202_v59, %v1924_v3  ;;  %s2849_s7 = sld [smem:[#allocation7 + $0x282]] }
  0x4c   :  { %vm295_vm6 = vcmp.lt.s32.totalorder %v276_v56, 1  ;;  %v279_v14 = vshrl.u32 %v1834_v22, %v278_v5  ;;  %v281_v15 = vshrl.u32 %v1835_v24, %v278_v5  ;;  %v284_v16 = vshrl.u32 %v1836_v26, %v278_v5  ;;  %s2857_s8 = sld [smem:[#allocation8 + $0x2]] }
  0x4d   :  { %v287_v17 = vshrl.u32 %v1837_v28, %v278_v5  ;;  %vm216_vm7 = vc.u32 %v1921_v63, %v1924_v3  ;;  %v217_v19 = vadd.s32 1, %v1925_v4  ;;  %v290_v18 = vshrl.u32 %v1838_v30, %v278_v5  ;;  %s2863_s9 = sld [smem:[#allocation7 + $0x3]] }
  0x4e   :  { %vm296_vm8 = vcmp.lt.s32.totalorder %v276_v56, 2  ;;  %v282_v20 = vor.u32 %v281_v15, %v280_v6  ;;  %v285_v21 = vor.u32 %v284_v16, %v283_v7  ;;  %v293_v25 = vshrl.u32 %v1839_v38, %v278_v5  ;;  %s2871_s10 = sld [smem:[#allocation10 + $0x100]] }
  0x4f   :  { %v288_v23 = vor.u32 %v287_v17, %v286_v8  ;;  %v218_v27 = vsel %vm216_vm7, %v217_v19, %v1925_v4  ;;  %v291_v29 = vor.u32 %v290_v18, %v289_v11  ;;  %vm297_vm9 = vcmp.lt.s32.totalorder %v276_v56, 3  ;;  %s2874_s11 = sld [smem:[#allocation7 + $0x83]] }
  0x50   :  { %vm298_vm10 = vcmp.lt.s32.totalorder %v276_v56, 4  ;;  %v219_v31 = vadd.s32 %v218_v27, %v214_v10  ;;  %v294_v32 = vor.u32 %v293_v25, %v292_v13  ;;  %v299_v33 = vsel %vm295_vm6, %v279_v14, %v282_v20  ;;  %s2895_s0 = sld [smem:[#allocation7 + $0x103]] }
  0x51   :  { %v300_v34 = vsel %vm298_vm10, %v288_v23, 2102212464  ;;  %v303_v36 = vsel %vm295_vm6, %v282_v20, %v285_v21  ;;  %v304_v37 = vsel %vm298_vm10, %v291_v29, 920167782  ;;  %v307_v39 = vsel %vm295_vm6, %v285_v21, %v288_v23  ;;  %s2902_s1 = sld [smem:[#allocation7 + $0x183]] }
  0x52   :  { %v301_v35 = vsel %vm297_vm9, %v285_v21, %v300_v34  ;;  %v220_v40 = vadd.s32 536870912, %v219_v31  ;;  %v305_v41 = vsel %vm297_vm9, %v288_v23, %v304_v37  ;;  %v308_v42 = vsel %vm298_vm10, %v294_v32, 1326507024  ;;  %v1986_v32 = vld [vmem:[#allocation3 + $0x18] sm:$0xff]  ;;  %s2996_s20 = sld [smem:[#allocation7 + $0x284]] }
  0x53   :  { %v302_v43 = vsel %vm296_vm8, %v299_v33, %v301_v35  ;;  %v306_v44 = vsel %vm296_vm8, %v303_v36, %v305_v41  ;;  %v309_v45 = vsel %vm297_vm9, %v291_v29, %v308_v42  ;;  %v1629_v46 = vadd.s32 4294967169, %v371_v53  ;;  %s3014_s21 = sld [smem:[#allocation7 + $0x5]] }
  0x54   :  { %v1949_v47 = vshrl.u32 %v220_v40, 30  ;;  %v310_v48 = vsel %vm296_vm8, %v307_v39, %v309_v45  ;;  %v1953_v49 = vmul.u32.u64.low %v1914_v57, %v306_v44  ;;  %v1954_v50 = vmul.u32.u64.high %v1914_v57, %v306_v44, %v1953_v49 }
  0x55   :  { %v1958_v51 = vmul.u32.u64.low %v1914_v57, %v310_v48  ;;  %v1959_v52 = vmul.u32.u64.high %v1914_v57, %v310_v48, %v1958_v51  ;;  %v377_v54 = vadd.s32 1, %v1629_v46  ;;  %v318_v58 = vmul.u32 %v1914_v57, %v302_v43 }
  0x56   :  { %v222_v55 = vshll.u32 %v1949_v47, 30  ;;  %v321_v56 = vadd.s32 1, %v1954_v50  ;;  %v367_v57 = vand.u32 2147483647, %v1893_v12  ;;  %v474_v44 = vand.u32 2139095040, %v1986_v32 }
  0x57   :  { %vm378_vm11 = vcmp.gt.s32.totalorder %v377_v54, 0  ;;  %vm320_vm12 = vc.u32 %v1959_v52, %v1953_v49  ;;  %v215_v51 = vadd.s32 %v1924_v3, %v1921_v63  ;;  %vm161_vm3 = vcmp.lt.s32.totalorder %v1883_v0, 0 }
  0x58   :  { %v1963_v53 = vsub.s32 %v219_v31, %v222_v55  ;;  %v379_v59 = vsel %vm378_vm11, %v377_v54, 0  ;;  %v322_v61 = vsel %vm320_vm12, %v321_v56, %v1954_v50  ;;  %v374_v25 = vand.u32 8388607, %v367_v57 }
  0x59   :  { %v381_v62 = vand.u32 31, %v379_v59  ;;  %v323_v4 = vadd.s32 %v322_v61, %v318_v58  ;;  %v380_v10 = vshrl.u32 %v379_v59, 5  ;;  %vm2044_vm5 = vcmp.le.f32.partialorder %v159_v1, 0.7853982  ;;  %v2056_v1 = vld [vmem:[#allocation3 + $0x30] sm:$0xff] }
  0x5a   :  { %v225_v60 = vsub.s32 0, %v1963_v53  ;;  %v375_v42 = vor.u32 8388608, %v374_v25  ;;  %vm265_vm6 = vcmp.lt.s32.totalorder %v1886_v2, 0  ;;  %vm2083_vm8 = vcmp.le.f32.partialorder %v263_v9, 0.7853982 }
  0x5b   :  { %v382_v6 = vsub.s32 32, %v381_v62  ;;  %v324_v7 = vadd.s32 536870912, %v323_v4  ;;  %v384_v11 = vshll.u32 %v1834_v22, %v381_v62  ;;  %v387_v13 = vshll.u32 %v1835_v24, %v381_v62 }
  0x5c   :  { %v1622_v5 = vmin.u32 %v225_v60, %v1963_v53  ;;  %v393_v17 = vshll.u32 %v1837_v28, %v381_v62  ;;  %v390_v18 = vshll.u32 %v1836_v26, %v381_v62  ;;  %v396_v31 = vshll.u32 %v1838_v30, %v381_v62 }
  0x5d   :  { %v1974_v14 = vshrl.u32 %v324_v7, 30  ;;  %v385_v15 = vshrl.u32 %v1835_v24, %v382_v6  ;;  %v388_v16 = vshrl.u32 %v1836_v26, %v382_v6  ;;  %v391_v20 = vshrl.u32 %v1837_v28, %v382_v6 }
  0x5e   :  { %v227_v8 = vclz %v1622_v5  ;;  %v394_v21 = vshrl.u32 %v1838_v30, %v382_v6  ;;  %v397_v36 = vshrl.u32 %v1839_v38, %v382_v6  ;;  %vm399_vm14 = vcmp.lt.s32.totalorder %v380_v10, 1 }
  0x5f   :  { %v326_v23 = vshll.u32 %v1974_v14, 30  ;;  %v386_v27 = vor.u32 %v385_v15, %v384_v11  ;;  %v389_v29 = vor.u32 %v388_v16, %v387_v13  ;;  %v392_v39 = vor.u32 %v391_v20, %v390_v18 }
  0x60   :  { %v1623_v19 = vadd.s32 4294967294, %v227_v8  ;;  %v395_v35 = vor.u32 %v394_v21, %v393_v17  ;;  %vm402_vm15 = vcmp.lt.s32.totalorder %v380_v10, 4  ;;  %v383_v41 = vshrl.u32 %v1834_v22, %v382_v6 }
  0x61   :  { %v1988_v34 = vsub.s32 %v323_v4, %v326_v23  ;;  %vm401_vm0 = vcmp.lt.s32.totalorder %v380_v10, 3  ;;  %vm400_vm1 = vcmp.lt.s32.totalorder %v380_v10, 2  ;;  %v404_v43 = vsel %vm402_vm15, %v392_v39, 2102212464 }
  0x62   :  { %vm1624_vm13 = vcmp.lt.s32.totalorder %v1623_v19, 0  ;;  %v398_v46 = vor.u32 %v397_v36, %v396_v31  ;;  %v407_v48 = vsel %vm399_vm14, %v386_v27, %v389_v29  ;;  %v408_v50 = vsel %vm402_vm15, %v395_v35, 920167782 }
  0x63   :  { %v230_v33 = vsel %vm1624_vm13, 0, %v1623_v19  ;;  %v329_v40 = vsub.s32 0, %v1988_v34  ;;  %v409_v58 = vsel %vm401_vm0, %v392_v39, %v408_v50  ;;  %v403_v59 = vsel %vm399_vm14, %v383_v41, %v386_v27 }
  0x64   :  { %v235_v37 = vsub.s32 4294967266, %v230_v33  ;;  %v231_v54 = vsub.s32 32, %v230_v33  ;;  %v405_v60 = vsel %vm401_vm0, %v389_v29, %v404_v43  ;;  %v410_v61 = vsel %vm400_vm1, %v407_v48, %v409_v58 }
  0x65   :  { %v1626_v45 = vmin.u32 %v329_v40, %v1988_v34  ;;  %v411_v62 = vsel %vm399_vm14, %v389_v29, %v392_v39  ;;  %v475_v4 = vshrl.u32 %v474_v44, 23  ;;  %v232_v5 = vshll.u32 %v1963_v53, %v230_v33 }
  0x66   :  { %v236_v55 = vadd.s32 127, %v235_v37  ;;  %v412_v7 = vsel %vm402_vm15, %v398_v46, 1326507024  ;;  %v415_v63 = vshll.u32 %v375_v42, 8  ;;  %v233_v3 = vshrl.u32 %v215_v51, %v231_v54 }
  0x67   :  { %v331_v56 = vclz %v1626_v45  ;;  %v406_v11 = vsel %vm400_vm1, %v403_v59, %v405_v60  ;;  %v413_v13 = vsel %vm401_vm0, %v395_v35, %v412_v7  ;;  %v245_v19 = vsub.s32 4, %v1949_v47  ;;  %v2054_v59 = vld [vmem:[#allocation3 + $0x28] sm:$0xff] }
  0x68   :  { %v237_v8 = vshll.u32 %v236_v55, 23  ;;  %v414_v15 = vsel %vm400_vm1, %v411_v62, %v413_v13  ;;  %v2010_v16 = vmul.u32.u64.low %v415_v63, %v410_v61  ;;  %v2011_v17 = vmul.u32.u64.high %v415_v63, %v410_v61, %v2010_v16 }
  0x69   :  { %v1627_v6 = vadd.s32 4294967294, %v331_v56  ;;  %v2015_v18 = vmul.u32.u64.low %v415_v63, %v414_v15  ;;  %v2016_v20 = vmul.u32.u64.high %v415_v63, %v414_v15, %v2015_v18  ;;  %v319_v21 = vadd.s32 %v1953_v49, %v1959_v52  ;;  %v2052_v56 = vld [vmem:[#allocation3 + $0x20] sm:$0xff] }
  0x6a   :  { %v234_v27 = vor.u32 %v233_v3, %v232_v5  ;;  %v238_v29 = vor.u32 4788187, %v237_v8  ;;  %v422_v31 = vmul.u32 %v415_v63, %v406_v11  ;;  %v1633_v10 = vadd.s32 4294967169, %v475_v4 }
  0x6b   :  { %vm1628_vm2 = vcmp.lt.s32.totalorder %v1627_v6, 0  ;;  %v425_v35 = vadd.s32 1, %v2011_v17  ;;  %v246_v36 = vsel %vm161_vm3, %v245_v19, %v1949_v47  ;;  %v349_v37 = vsub.s32 4, %v1974_v14 }
  0x6c   :  { %v334_v53 = vsel %vm1628_vm2, 0, %v1627_v6  ;;  %vm424_vm4 = vc.u32 %v2016_v20, %v2010_v16  ;;  %v239_v41 = vand.u32 2147483647, %v238_v29  ;;  %v241_v42 = vcvt.s32.f32 %v234_v27 }
  0x6d   :  { %v335_v23 = vsub.s32 32, %v334_v53  ;;  %v339_v25 = vsub.s32 4294967266, %v334_v53  ;;  %v336_v49 = vshll.u32 %v1988_v34, %v334_v53  ;;  %v426_v40 = vsel %vm424_vm4, %v425_v35, %v2011_v17 }
  0x6e   :  { %v427_v43 = vadd.s32 %v426_v40, %v422_v31  ;;  %v481_v44 = vadd.s32 1, %v1633_v10  ;;  %v2032_v45 = vmul.f32 %v1883_v0, %v1883_v0  ;;  %v2036_v47 = vmul.f32 %v1886_v2, %v1886_v2 }
  0x6f   :  { %v340_v33 = vadd.s32 127, %v339_v25  ;;  %v337_v52 = vshrl.u32 %v319_v21, %v335_v23  ;;  %v2040_v46 = vmul.f32 %v1893_v12, %v1893_v12  ;;  %v471_v50 = vand.u32 2147483647, %v1986_v32 }
  0x70   :  { %v428_v48 = vadd.s32 536870912, %v427_v43  ;;  %vm482_vm7 = vcmp.gt.s32.totalorder %v481_v44, 0  ;;  %v248_v51 = vsel %vm2044_vm5, 0, %v246_v36  ;;  %v242_v60 = vmul.f32 %v241_v42, %v239_v41 }
  0x71   :  { %v341_v39 = vshll.u32 %v340_v33, 23  ;;  %v338_v54 = vor.u32 %v337_v52, %v336_v49  ;;  %v483_v58 = vsel %vm482_vm7, %v481_v44, 0  ;;  %v350_v61 = vsel %vm265_vm6, %v349_v37, %v1974_v14 }
  0x72   :  { %v2061_v62 = vshrl.u32 %v428_v48, 30  ;;  %v485_v4 = vand.u32 31, %v483_v58  ;;  %v2065_v5 = vmul.f32 %v1986_v32, %v1986_v32  ;;  %v2069_v6 = vmul.f32 %v2052_v56, %v2052_v56 }
  0x73   :  { %v342_v55 = vor.u32 4788187, %v341_v39  ;;  %v2073_v7 = vmul.f32 %v2054_v59, %v2054_v59  ;;  %v2077_v63 = vmul.f32 %v2056_v1, %v2056_v1  ;;  %v2079_v14 = vadd.s32 3, %v248_v51 }
  0x74   :  { %v430_v8 = vshll.u32 %v2061_v62, 30  ;;  %v486_v11 = vsub.s32 32, %v485_v4  ;;  %v345_v15 = vcvt.s32.f32 %v338_v54  ;;  %v352_v17 = vsel %vm2083_vm8, 0, %v350_v61 }
  0x75   :  { %v343_v13 = vand.u32 2147483647, %v342_v55  ;;  %v478_v19 = vand.u32 8388607, %v471_v50  ;;  %v243_v53 = vxor.u32 2147483648, %v242_v60  ;;  %v488_v21 = vshll.u32 %v1834_v22, %v485_v4 }
  0x76   :  { %v2092_v18 = vsub.s32 %v427_v43, %v430_v8  ;;  %v489_v9 = vshrl.u32 %v1835_v24, %v486_v11  ;;  %v491_v23 = vshll.u32 %v1835_v24, %v485_v4  ;;  %v492_v25 = vshrl.u32 %v1836_v26, %v486_v11 }
  0x77   :  { %v497_v27 = vshll.u32 %v1837_v28, %v485_v4  ;;  %v578_v29 = vand.u32 2139095040, %v2052_v56  ;;  %v484_v10 = vshrl.u32 %v483_v58, 5  ;;  %v494_v33 = vshll.u32 %v1836_v26, %v485_v4 }
  0x78   :  { %v433_v31 = vsub.s32 0, %v2092_v18  ;;  %v495_v35 = vshrl.u32 %v1837_v28, %v486_v11  ;;  %v346_v36 = vmul.f32 %v345_v15, %v343_v13  ;;  %v2103_v37 = vadd.s32 3, %v352_v17 }
  0x79   :  { %v479_v49 = vor.u32 8388608, %v478_v19  ;;  %v498_v52 = vshrl.u32 %v1838_v30, %v486_v11  ;;  %v244_v39 = vsel %vm161_vm3, %v243_v53, %v242_v60  ;;  %v490_v41 = vor.u32 %v489_v9, %v488_v21 }
  0x7a   :  { %v1630_v40 = vmin.u32 %v433_v31, %v2092_v18  ;;  %v575_v42 = vand.u32 2147483647, %v2052_v56  ;;  %v493_v43 = vor.u32 %v492_v25, %v491_v23  ;;  %v500_v48 = vshll.u32 %v1838_v30, %v485_v4 }
  0x7b   :  { %v499_v44 = vor.u32 %v498_v52, %v497_v27  ;;  %v501_v51 = vshrl.u32 %v1839_v38, %v486_v11  ;;  %vm369_vm9 = vcmp.lt.s32.totalorder %v1893_v12, 0  ;;  %v496_v55 = vor.u32 %v495_v35, %v494_v33 }
  0x7c   :  { %v435_v54 = vclz %v1630_v40  ;;  %vm503_vm10 = vcmp.lt.s32.totalorder %v484_v10, 1  ;;  %v579_v58 = vshrl.u32 %v578_v29, 23  ;;  %v347_v61 = vxor.u32 2147483648, %v346_v36 }
  0x7d   :  { %v423_v60 = vadd.s32 %v2010_v16, %v2016_v20  ;;  %vm505_vm11 = vcmp.lt.s32.totalorder %v484_v10, 3  ;;  %v519_v8 = vshll.u32 %v479_v49, 8  ;;  %v487_v15 = vshrl.u32 %v1834_v22, %v486_v11 }
  0x7e   :  { %v1631_v13 = vadd.s32 4294967294, %v435_v54  ;;  %vm504_vm12 = vcmp.lt.s32.totalorder %v484_v10, 2  ;;  %vm506_vm13 = vcmp.lt.s32.totalorder %v484_v10, 4  ;;  %v502_v4 = vor.u32 %v501_v51, %v500_v48 }
  0x7f   :  { %v508_v17 = vsel %vm506_vm13, %v496_v55, 2102212464  ;;  %v511_v19 = vsel %vm503_vm10, %v490_v41, %v493_v43  ;;  %v512_v53 = vsel %vm506_vm13, %v499_v44, 920167782  ;;  %v247_v21 = vsel %vm2044_vm5, %v1883_v0, %v244_v39 }
  0x80   :  { %vm1632_vm14 = vcmp.lt.s32.totalorder %v1631_v13, 0  ;;  %v513_v16 = vsel %vm505_vm11, %v496_v55, %v512_v53  ;;  %v1637_v20 = vadd.s32 4294967169, %v579_v58  ;;  %v348_v11 = vsel %vm265_vm6, %v347_v61, %v346_v36 }
  0x81   :  { %v438_v9 = vsel %vm1632_vm14, 0, %v1631_v13  ;;  %v453_v23 = vsub.s32 4, %v2061_v62  ;;  %v514_v25 = vsel %vm504_vm12, %v511_v19, %v513_v16  ;;  %v507_v29 = vsel %vm503_vm10, %v487_v15, %v490_v41 }
  0x82   :  { %v443_v27 = vsub.s32 4294967266, %v438_v9  ;;  %v509_v31 = vsel %vm505_vm11, %v493_v43, %v508_v17  ;;  %v515_v34 = vsel %vm503_vm10, %v493_v43, %v496_v55  ;;  %v439_v33 = vsub.s32 32, %v438_v9 }
  0x83   :  { %v516_v35 = vsel %vm506_vm13, %v502_v4, 1326507024  ;;  %v2131_v49 = vmul.u32.u64.low %v519_v8, %v514_v25  ;;  %v2132_v52 = vmul.u32.u64.high %v519_v8, %v514_v25, %v2131_v49  ;;  %1698 = vcosq.f32 %v247_v21 }
  0x84   :  { %v444_v36 = vadd.s32 127, %v443_v27  ;;  %v517_v39 = vsel %vm505_vm11, %v499_v44, %v516_v35  ;;  %v585_v40 = vadd.s32 1, %v1637_v20  ;;  %1700 = vsinq.f32 %v247_v21  ;;  %v2148_v44 = vld [vmem:[#allocation3 + $0x38] sm:$0xff] }
  0x85   :  { %v454_v41 = vsel %vm369_vm9, %v453_v23, %v2061_v62  ;;  %v510_v48 = vsel %vm504_vm12, %v507_v29, %v509_v31  ;;  %v518_v43 = vsel %vm504_vm12, %v515_v34, %v517_v39  ;;  %v351_v51 = vsel %vm2083_vm8, %v1886_v2, %v348_v11 }
  0x86   :  { %v440_v54 = vshll.u32 %v2092_v18, %v438_v9  ;;  %v2145_v55 = vmul.u32.u64.low %v519_v8, %v518_v43  ;;  %v2146_v58 = vmul.u32.u64.high %v519_v8, %v518_v43, %v2145_v55  ;;  %v441_v61 = vshrl.u32 %v423_v60, %v439_v33 }
  0x87   :  { %v445_v13 = vshll.u32 %v444_v36, 23  ;;  %v529_v15 = vadd.s32 1, %v2132_v52  ;;  %vm586_vm15 = vcmp.gt.s32.totalorder %v585_v40, 0  ;;  %v2153_v62 = vmul.f32 %v2148_v44, %v2148_v44 }
  0x88   :  { %vm2157_vm0 = vcmp.le.f32.partialorder %v367_v57, 0.7853982  ;;  %v526_v18 = vmul.u32 %v519_v8, %v510_v48  ;;  %v587_v10 = vsel %vm586_vm15, %v585_v40, 0  ;;  %v2162_v4 = vand.u32 3, %v2079_v14 }
  0x89   :  { %v2165_v60 = vand.u32 3, %v2103_v37  ;;  %v589_v17 = vand.u32 31, %v587_v10  ;;  %v682_v19 = vand.u32 2139095040, %v2054_v59  ;;  %1702 = vcosq.f32 %v351_v51 }
  0x8a   :  { %v456_v53 = vsel %vm2157_vm0, 0, %v454_v41  ;;  %vm528_vm1 = vc.u32 %v2146_v58, %v2131_v49  ;;  %v582_v57 = vand.u32 8388607, %v575_v42  ;;  %v442_v8 = vor.u32 %v441_v61, %v440_v54 }
  0x8b   :  { %v446_v21 = vor.u32 4788187, %v445_v13  ;;  %v530_v14 = vsel %vm528_vm1, %v529_v15, %v2132_v52  ;;  %v590_v16 = vsub.s32 32, %v589_v17  ;;  %1704 = vsinq.f32 %v351_v51 }
  0x8c   :  { %v531_v37 = vadd.s32 %v530_v14, %v526_v18  ;;  %v592_v20 = vshll.u32 %v1834_v22, %v589_v17  ;;  %v595_v11 = vshll.u32 %v1835_v24, %v589_v17  ;;  %v588_v9 = vshrl.u32 %v587_v10, 5 }
  0x8d   :  { %v593_v23 = vshrl.u32 %v1835_v24, %v590_v16  ;;  %v596_v25 = vshrl.u32 %v1836_v26, %v590_v16  ;;  %v683_v27 = vshrl.u32 %v682_v19, 23  ;;  %v598_v31 = vshll.u32 %v1836_v26, %v589_v17 }
  0x8e   :  { %v532_v29 = vadd.s32 536870912, %v531_v37  ;;  %v599_v34 = vshrl.u32 %v1837_v28, %v590_v16  ;;  %v601_v33 = vshll.u32 %v1837_v28, %v589_v17  ;;  %v447_v35 = vand.u32 2147483647, %v446_v21 }
  0x8f   :  { %v449_v52 = vcvt.s32.f32 %v442_v8  ;;  %v602_v36 = vshrl.u32 %v1838_v30, %v590_v16  ;;  %v604_v39 = vshll.u32 %v1838_v30, %v589_v17  ;;  %v594_v41 = vor.u32 %v593_v23, %v592_v20 }
  0x90   :  { %v2184_v40 = vshrl.u32 %v532_v29, 30  ;;  %v597_v48 = vor.u32 %v596_v25, %v595_v11  ;;  %v605_v43 = vshrl.u32 %v1839_v38, %v590_v16  ;;  %v1699_v51 = vpop.eup %1698  ;;  %v583_v54 = vor.u32 8388608, %v582_v57 }
  0x91   :  { %v603_v55 = vor.u32 %v602_v36, %v601_v33  ;;  %vm607_vm2 = vcmp.lt.s32.totalorder %v588_v9, 1  ;;  %v679_v61 = vand.u32 2147483647, %v2054_v59  ;;  %v1701_v13 = vpop.eup %1700  ;;  %vm255_vm3 = vcmp.eq.s32.totalorder %v2162_v4, 0 }
  0x92   :  { %v460_v15 = vadd.s32 3, %v456_v53  ;;  %v534_v18 = vshll.u32 %v2184_v40, 30  ;;  %v600_v10 = vor.u32 %v599_v34, %v598_v31  ;;  %v1641_v17 = vadd.s32 4294967169, %v683_v27 }
  0x93   :  { %v450_v19 = vmul.f32 %v449_v52, %v447_v35  ;;  %v606_v8 = vor.u32 %v605_v43, %v604_v39  ;;  %vm609_vm4 = vcmp.lt.s32.totalorder %v588_v9, 3  ;;  %vm610_vm5 = vcmp.lt.s32.totalorder %v588_v9, 4 }
  0x94   :  { %v2190_v21 = vsub.s32 %v531_v37, %v534_v18  ;;  %v591_v57 = vshrl.u32 %v1834_v22, %v590_v16  ;;  %vm608_vm6 = vcmp.lt.s32.totalorder %v588_v9, 2  ;;  %v615_v14 = vsel %vm607_vm2, %v594_v41, %v597_v48 }
  0x95   :  { %v259_v20 = vxor.u32 2147483648, %v1699_v51  ;;  %v612_v11 = vsel %vm610_vm5, %v600_v10, 2102212464  ;;  %v616_v53 = vsel %vm610_vm5, %v603_v55, 920167782  ;;  %v623_v23 = vshll.u32 %v583_v54, 8 }
  0x96   :  { %v256_v25 = vxor.u32 2147483648, %v1701_v13  ;;  %v537_v27 = vsub.s32 0, %v2190_v21  ;;  %v617_v29 = vsel %vm609_vm4, %v600_v10, %v616_v53  ;;  %v619_v31 = vsel %vm607_vm2, %v597_v48, %v600_v10  ;;  %v2199_v37 = vpop.eup %1702 }
  0x97   :  { %v451_v34 = vxor.u32 2147483648, %v450_v19  ;;  %v618_v16 = vsel %vm608_vm6, %v615_v14, %v617_v29  ;;  %v620_v33 = vsel %vm610_vm5, %v606_v8, 1326507024  ;;  %v689_v35 = vadd.s32 1, %v1641_v17 }
  0x98   :  { %v1634_v52 = vmin.u32 %v537_v27, %v2190_v21  ;;  %v611_v36 = vsel %vm607_vm2, %v591_v57, %v594_v41  ;;  %v613_v39 = vsel %vm609_vm4, %v597_v48, %v612_v11  ;;  %v621_v43 = vsel %vm609_vm4, %v603_v55, %v620_v33  ;;  %v2207_v54 = vpop.eup %1704 }
  0x99   :  { %v622_v18 = vsel %vm608_vm6, %v619_v31, %v621_v43  ;;  %v2210_v10 = vmul.u32.u64.low %v623_v23, %v618_v16  ;;  %v2211_v53 = vmul.u32.u64.high %v623_v23, %v618_v16, %v2210_v10  ;;  %vm690_vm7 = vcmp.gt.s32.totalorder %v689_v35, 0 }
  0x9a   :  { %vm258_vm8 = vcmp.eq.s32.totalorder %v2162_v4, 2  ;;  %vm362_vm10 = vcmp.eq.s32.totalorder %v2165_v60, 2  ;;  %v2216_v17 = vand.u32 3, %v460_v15  ;;  %v539_v41 = vclz %v1634_v52 }
  0x9b   :  { %v614_v48 = vsel %vm608_vm6, %v611_v36, %v613_v39  ;;  %v2219_v8 = vmul.u32.u64.low %v623_v23, %v622_v18  ;;  %v2220_v55 = vmul.u32.u64.high %v623_v23, %v622_v18, %v2219_v8  ;;  %v691_v57 = vsel %vm690_vm7, %v689_v35, 0 }
  0x9c   :  { %v363_v14 = vxor.u32 2147483648, %v2199_v37  ;;  %v452_v11 = vsel %vm369_vm9, %v451_v34, %v450_v19  ;;  %v1635_v27 = vadd.s32 4294967294, %v539_v41  ;;  %v693_v29 = vand.u32 31, %v691_v57 }
  0x9d   :  { %v2227_v31 = vsel %vm255_vm3, %v1699_v51, %v256_v25  ;;  %v2229_v15 = vsel %vm258_vm8, %v259_v20, %v1701_v13  ;;  %v633_v9 = vadd.s32 1, %v2211_v53  ;;  %v686_v16 = vand.u32 8388607, %v679_v61 }
  0x9e   :  { %v527_v33 = vadd.s32 %v2131_v49, %v2146_v58  ;;  %vm1636_vm11 = vcmp.lt.s32.totalorder %v1635_v27, 0  ;;  %v630_v35 = vmul.u32 %v623_v23, %v614_v48  ;;  %v694_v52 = vsub.s32 32, %v693_v29 }
  0x9f   :  { %v360_v19 = vxor.u32 2147483648, %v2207_v54  ;;  %v455_v51 = vsel %vm2157_vm0, %v1893_v12, %v452_v11  ;;  %v542_v25 = vsel %vm1636_vm11, 0, %v1635_v27  ;;  %vm632_vm9 = vc.u32 %v2220_v55, %v2210_v10 }
  0xa0   :  { %v2245_v13 = vsel %vm362_vm10, %v363_v14, %v2207_v54  ;;  %vm473_vm12 = vcmp.lt.s32.totalorder %v1986_v32, 0  ;;  %v543_v49 = vsub.s32 32, %v542_v25  ;;  %v544_v58 = vshll.u32 %v2190_v21, %v542_v25 }
  0xa1   :  { %v547_v20 = vsub.s32 4294967266, %v542_v25  ;;  %v634_v23 = vsel %vm632_vm9, %v633_v9, %v2211_v53  ;;  %v687_v34 = vor.u32 8388608, %v686_v16  ;;  %v696_v12 = vshll.u32 %v1834_v22, %v693_v29 }
  0xa2   :  { %v697_v3 = vshrl.u32 %v1835_v24, %v694_v52  ;;  %1706 = vcosq.f32 %v455_v51  ;;  %v545_v36 = vshrl.u32 %v527_v33, %v543_v49  ;;  %v635_v43 = vadd.s32 %v634_v23, %v630_v35 }
  0xa3   :  { %v548_v39 = vadd.s32 127, %v547_v20  ;;  %v699_v18 = vshll.u32 %v1835_v24, %v693_v29  ;;  %v700_v41 = vshrl.u32 %v1836_v26, %v694_v52  ;;  %v702_v48 = vshll.u32 %v1836_v26, %v693_v29 }
  0xa4   :  { %v703_v21 = vshrl.u32 %v1837_v28, %v694_v52  ;;  %vm2258_vm13 = vcmp.le.f32.partialorder %v471_v50, 0.7853982  ;;  %v546_v8 = vor.u32 %v545_v36, %v544_v58  ;;  %v636_v11 = vadd.s32 536870912, %v635_v43 }
  0xa5   :  { %v549_v14 = vshll.u32 %v548_v39, 23  ;;  %v692_v27 = vshrl.u32 %v691_v57, 5  ;;  %vm359_vm14 = vcmp.eq.s32.totalorder %v2165_v60, 0  ;;  %1708 = vsinq.f32 %v455_v51 }
  0xa6   :  { %v557_v9 = vsub.s32 4, %v2184_v40  ;;  %v698_v16 = vor.u32 %v697_v3, %v696_v12  ;;  %v705_v33 = vshll.u32 %v1837_v28, %v693_v29  ;;  %vm254_vm15 = vcmp.lt.s32.totalorder %v2162_v4, 2 }
  0xa7   :  { %v550_v35 = vor.u32 4788187, %v549_v14  ;;  %v553_v25 = vcvt.s32.f32 %v546_v8  ;;  %v2266_v50 = vshrl.u32 %v636_v11, 30  ;;  %v706_v49 = vshrl.u32 %v1838_v30, %v694_v52 }
  0xa8   :  { %v701_v58 = vor.u32 %v700_v41, %v699_v18  ;;  %v704_v20 = vor.u32 %v703_v21, %v702_v48  ;;  %v708_v57 = vshll.u32 %v1838_v30, %v693_v29  ;;  %v709_v23 = vshrl.u32 %v1839_v38, %v694_v52 }
  0xa9   :  { %vm358_vm0 = vcmp.lt.s32.totalorder %v2165_v60, 2  ;;  %v551_v51 = vand.u32 2147483647, %v550_v35  ;;  %v638_v12 = vshll.u32 %v2266_v50, 30  ;;  %v707_v3 = vor.u32 %v706_v49, %v705_v33 }
  0xaa   :  { %vm711_vm1 = vcmp.lt.s32.totalorder %v692_v27, 1  ;;  %v558_v36 = vsel %vm473_vm12, %v557_v9, %v2184_v40  ;;  %v695_v39 = vshrl.u32 %v1834_v22, %v694_v52  ;;  %v710_v8 = vor.u32 %v709_v23, %v708_v57 }
  0xab   :  { %vm714_vm2 = vcmp.lt.s32.totalorder %v692_v27, 4  ;;  %v554_v18 = vmul.f32 %v553_v25, %v551_v51  ;;  %v2277_v41 = vsub.s32 %v635_v43, %v638_v12  ;;  %vm713_vm3 = vcmp.lt.s32.totalorder %v692_v27, 3 }
  0xac   :  { %v716_v29 = vsel %vm714_vm2, %v704_v20, 2102212464  ;;  %vm577_vm4 = vcmp.lt.s32.totalorder %v2052_v56, 0  ;;  %vm712_vm5 = vcmp.lt.s32.totalorder %v692_v27, 2  ;;  %v719_v48 = vsel %vm711_vm1, %v698_v16, %v701_v58 }
  0xad   :  { %v720_v21 = vsel %vm714_vm2, %v707_v3, 920167782  ;;  %v727_v14 = vshll.u32 %v687_v34, 8  ;;  %v555_v11 = vxor.u32 2147483648, %v554_v18  ;;  %v641_v40 = vsub.s32 0, %v2277_v41 }
  0xae   :  { %v783_v52 = vand.u32 2147483647, %v2056_v1  ;;  %v786_v9 = vand.u32 2139095040, %v2056_v1  ;;  %v715_v43 = vsel %vm711_vm1, %v695_v39, %v698_v16  ;;  %v717_v33 = vsel %vm713_vm3, %v701_v58, %v716_v29 }
  0xaf   :  { %v721_v35 = vsel %vm713_vm3, %v704_v20, %v720_v21  ;;  %v724_v25 = vsel %vm714_vm2, %v710_v8, 1326507024  ;;  %v556_v49 = vsel %vm473_vm12, %v555_v11, %v554_v18  ;;  %vm2294_vm6 = vcmp.le.f32.partialorder %v575_v42, 0.7853982  ;;  %v1707_v51 = vpop.eup %1706 }
  0xb0   :  { %v1638_v57 = vmin.u32 %v641_v40, %v2277_v41  ;;  %v722_v23 = vsel %vm712_vm5, %v719_v48, %v721_v35  ;;  %v723_v16 = vsel %vm711_vm1, %v701_v58, %v704_v20  ;;  %vm251_vm7 = vweird.f32 %v1883_v0 }
  0xb1   :  { %vm355_vm8 = vweird.f32 %v1886_v2  ;;  %v559_v12 = vsel %vm2258_vm13, %v1986_v32, %v556_v49  ;;  %v725_v42 = vsel %vm713_vm3, %v707_v3, %v724_v25  ;;  %v361_v58 = vsel %vm359_vm14, %v2199_v37, %v360_v19 }
  0xb2   :  { %v2307_v39 = vmul.u32.u64.low %v727_v14, %v722_v23  ;;  %v2308_v8 = vmul.u32.u64.high %v727_v14, %v722_v23, %v2307_v39  ;;  %vm466_vm10 = vcmp.eq.s32.totalorder %v2216_v17, 2  ;;  %v560_v20 = vsel %vm2258_vm13, 0, %v558_v36  ;;  %v1709_v19 = vpop.eup %1708 }
  0xb3   :  { %v643_v18 = vclz %v1638_v57  ;;  %v661_v29 = vsub.s32 4, %v2266_v50  ;;  %v261_v3 = vsel %vm254_vm15, %v2227_v31, %v2229_v15  ;;  %vm463_vm11 = vcmp.eq.s32.totalorder %v2216_v17, 0 }
  0xb4   :  { %v718_v54 = vsel %vm712_vm5, %v715_v43, %v717_v33  ;;  %v726_v48 = vsel %vm712_vm5, %v723_v16, %v725_v42  ;;  %v787_v37 = vshrl.u32 %v786_v9, 23  ;;  %1710 = vcosq.f32 %v559_v12 }
  0xb5   :  { %v1639_v21 = vadd.s32 4294967294, %v643_v18  ;;  %v2327_v53 = vmul.u32.u64.low %v727_v14, %v726_v48  ;;  %v2328_v36 = vmul.u32.u64.high %v727_v14, %v726_v48, %v2327_v53  ;;  %v365_v11 = vsel %vm358_vm0, %v361_v58, %v2245_v13 }
  0xb6   :  { %v564_v40 = vadd.s32 3, %v560_v20  ;;  %v1645_v4 = vadd.s32 4294967169, %v787_v37  ;;  %v790_v31 = vand.u32 8388607, %v783_v52  ;;  %v631_v15 = vadd.s32 %v2210_v10, %v2220_v55 }
  0xb7   :  { %vm1640_vm9 = vcmp.lt.s32.totalorder %v1639_v21, 0  ;;  %v662_v27 = vsel %vm577_vm4, %v661_v29, %v2266_v50  ;;  %v737_v9 = vadd.s32 1, %v2308_v8  ;;  %1712 = vsinq.f32 %v559_v12 }
  0xb8   :  { %v646_v43 = vsel %vm1640_vm9, 0, %v1639_v21  ;;  %v734_v33 = vmul.u32 %v727_v14, %v718_v54  ;;  %v793_v60 = vadd.s32 1, %v1645_v4  ;;  %v467_v13 = vxor.u32 2147483648, %v1707_v51 }
  0xb9   :  { %v647_v35 = vsub.s32 32, %v646_v43  ;;  %v648_v25 = vshll.u32 %v2277_v41, %v646_v43  ;;  %v651_v49 = vsub.s32 4294967266, %v646_v43  ;;  %v464_v57 = vxor.u32 2147483648, %v1709_v19 }
  0xba   :  { %v664_v10 = vsel %vm2294_vm6, 0, %v662_v27  ;;  %vm736_vm12 = vc.u32 %v2328_v36, %v2307_v39  ;;  %vm794_vm13 = vcmp.gt.s32.totalorder %v793_v60, 0  ;;  %v791_v12 = vor.u32 8388608, %v790_v31 }
  0xbb   :  { %v649_v55 = vshrl.u32 %v631_v15, %v647_v35  ;;  %v652_v50 = vadd.s32 127, %v651_v49  ;;  %v738_v23 = vsel %vm736_vm12, %v737_v9, %v2308_v8  ;;  %v795_v16 = vsel %vm794_vm13, %v793_v60, 0 }
  0xbc   :  { %v739_v14 = vadd.s32 %v738_v23, %v734_v33  ;;  %v797_v42 = vand.u32 31, %v795_v16  ;;  %v890_v58 = vand.u32 2139095040, %v2148_v44  ;;  %v2350_v41 = vsel %vm251_vm7, nan, %v261_v3 }
  0xbd   :  { %v2354_v20 = vsel %vm355_vm8, nan, %v365_v11  ;;  %v650_v18 = vor.u32 %v649_v55, %v648_v25  ;;  %v653_v29 = vshll.u32 %v652_v50, 23  ;;  %v2358_v54 = vsel %vm466_vm10, %v467_v13, %v1709_v19 }
  0xbe   :  { %v2360_v8 = vand.u32 3, %v564_v40  ;;  %v740_v48 = vadd.s32 536870912, %v739_v14  ;;  %v798_v37 = vsub.s32 32, %v797_v42  ;;  %v2364_v21 = vsel %vm463_vm11, %v1707_v51, %v464_v57 }
  0xbf   :  { %v654_v0 = vor.u32 4788187, %v653_v29  ;;  %v657_v3 = vcvt.s32.f32 %v650_v18  ;;  %v2366_v53 = vadd.s32 3, %v664_v10  ;;  %v2370_v11 = vshll.u32 %v791_v12, 8 }
  0xc0   :  { %v2368_v2 = vshrl.u32 %v740_v48, 30  ;;  %v887_v4 = vand.u32 2147483647, %v2148_v44  ;;  %v891_v19 = vshrl.u32 %v890_v58, 23  ;;  %v2373_v40 = vshrl.u32 %v795_v16, 5 }
  0xc1   :  { %v655_v31 = vand.u32 2147483647, %v654_v0  ;;  %v800_v15 = vshll.u32 %v1834_v22, %v797_v42  ;;  %v803_v27 = vshll.u32 %v1835_v24, %v797_v42  ;;  %v2377_v51 = vpop.eup %1710  ;;  %v801_v43 = vshrl.u32 %v1835_v24, %v798_v37 }
  0xc2   :  { %v742_v9 = vshll.u32 %v2368_v2, 30  ;;  %v804_v33 = vshrl.u32 %v1836_v26, %v798_v37  ;;  %v806_v60 = vshll.u32 %v1836_v26, %v797_v42  ;;  %v807_v35 = vshrl.u32 %v1837_v28, %v798_v37 }
  0xc3   :  { %v658_v13 = vmul.f32 %v657_v3, %v655_v31  ;;  %v809_v25 = vshll.u32 %v1837_v28, %v797_v42  ;;  %v810_v49 = vshrl.u32 %v1838_v30, %v798_v37  ;;  %v2388_v57 = vadd.s32 %v2307_v39, %v2328_v36 }
  0xc4   :  { %v2390_v10 = vsub.s32 %v739_v14, %v742_v9  ;;  %v1649_v55 = vadd.s32 4294967169, %v891_v19  ;;  %v2394_v50 = vand.u32 8388607, %v887_v4  ;;  %v2396_v23 = vpop.eup %1712  ;;  %v571_v16 = vxor.u32 2147483648, %v2377_v51 }
  0xc5   :  { %v659_v12 = vxor.u32 2147483648, %v658_v13  ;;  %v799_v58 = vshrl.u32 %v1834_v22, %v798_v37  ;;  %v812_v18 = vshll.u32 %v1838_v30, %v797_v42  ;;  %vm462_vm14 = vcmp.lt.s32.totalorder %v2216_v17, 2 }
  0xc6   :  { %vm681_vm15 = vcmp.lt.s32.totalorder %v2054_v59, 0  ;;  %v745_v39 = vsub.s32 0, %v2390_v10  ;;  %v802_v36 = vor.u32 %v801_v43, %v800_v15  ;;  %v805_v14 = vor.u32 %v804_v33, %v803_v27  ;;  %v2419_v27 = vld [vmem:[#allocation3 + $0x10] sm:$0xff] }
  0xc7   :  { %v813_v29 = vshrl.u32 %v1839_v38, %v798_v37  ;;  %v660_v48 = vsel %vm577_vm4, %v659_v12, %v658_v13  ;;  %v808_v0 = vor.u32 %v807_v35, %v806_v60  ;;  %v811_v3 = vor.u32 %v810_v49, %v809_v25 }
  0xc8   :  { %vm815_vm0 = vcmp.lt.s32.totalorder %v2373_v40, 1  ;;  %v568_v19 = vxor.u32 2147483648, %v2396_v23  ;;  %vm570_vm1 = vcmp.eq.s32.totalorder %v2360_v8, 2  ;;  %v663_v42 = vsel %vm2294_vm6, %v2052_v56, %v660_v48 }
  0xc9   :  { %v1642_v31 = vmin.u32 %v745_v39, %v2390_v10  ;;  %v814_v15 = vor.u32 %v813_v29, %v812_v18  ;;  %vm567_vm2 = vcmp.eq.s32.totalorder %v2360_v8, 0  ;;  %v765_v37 = vsub.s32 4, %v2368_v2 }
  0xca   :  { %vm816_vm3 = vcmp.lt.s32.totalorder %v2373_v40, 2  ;;  %vm817_vm4 = vcmp.lt.s32.totalorder %v2373_v40, 3  ;;  %vm818_vm5 = vcmp.lt.s32.totalorder %v2373_v40, 4  ;;  %vm459_vm7 = vweird.f32 %v2419_v27 }
  0xcb   :  { %1714 = vcosq.f32 %v663_v42  ;;  %vm2424_vm6 = vcmp.le.f32.partialorder %v679_v61, 0.7853982  ;;  %v747_v9 = vclz %v1642_v31  ;;  %v819_v43 = vsel %vm815_vm0, %v799_v58, %v802_v36 }
  0xcc   :  { %v823_v33 = vsel %vm815_vm0, %v802_v36, %v805_v14  ;;  %1716 = vsinq.f32 %v663_v42  ;;  %v820_v60 = vsel %vm818_vm5, %v808_v0, 2102212464  ;;  %v824_v13 = vsel %vm818_vm5, %v811_v3, 920167782 }
  0xcd   :  { %v827_v61 = vsel %vm815_vm0, %v805_v14, %v808_v0  ;;  %vm566_vm8 = vcmp.lt.s32.totalorder %v2360_v8, 2  ;;  %v1643_v35 = vadd.s32 4294967294, %v747_v9  ;;  %v821_v25 = vsel %vm817_vm4, %v805_v14, %v820_v60 }
  0xce   :  { %v825_v49 = vsel %vm817_vm4, %v808_v0, %v824_v13  ;;  %v828_v12 = vsel %vm818_vm5, %v814_v15, 1326507024  ;;  %v822_v58 = vsel %vm816_vm3, %v819_v43, %v821_v25  ;;  %v897_v36 = vadd.s32 1, %v1649_v55 }
  0xcf   :  { %v826_v18 = vsel %vm816_vm3, %v823_v33, %v825_v49  ;;  %v829_v39 = vsel %vm817_vm4, %v811_v3, %v828_v12  ;;  %vm1644_vm10 = vcmp.lt.s32.totalorder %v1643_v35, 0  ;;  %vm563_vm11 = vweird.f32 %v1986_v32 }
  0xd0   :  { %v830_v14 = vsel %vm816_vm3, %v827_v61, %v829_v39  ;;  %v2454_v29 = vmul.u32.u64.low %v2370_v11, %v826_v18  ;;  %v2455_v48 = vmul.u32.u64.high %v2370_v11, %v826_v18, %v2454_v29  ;;  %v750_v0 = vsel %vm1644_vm10, 0, %v1643_v35 }
  0xd1   :  { %v766_v42 = vsel %vm681_vm15, %v765_v37, %v2368_v2  ;;  %v2463_v31 = vmul.u32.u64.low %v2370_v11, %v830_v14  ;;  %v2464_v3 = vmul.u32.u64.high %v2370_v11, %v830_v14, %v2463_v31  ;;  %v751_v55 = vsub.s32 32, %v750_v0 }
  0xd2   :  { %v752_v40 = vshll.u32 %v2390_v10, %v750_v0  ;;  %v755_v15 = vsub.s32 4294967266, %v750_v0  ;;  %vm898_vm9 = vcmp.gt.s32.totalorder %v897_v36, 0  ;;  %v469_v9 = vsel %vm462_vm14, %v2364_v21, %v2358_v54 }
  0xd3   :  { %v838_v43 = vmul.u32 %v2370_v11, %v822_v58  ;;  %v895_v33 = vor.u32 8388608, %v2394_v50  ;;  %v899_v60 = vsel %vm898_vm9, %v897_v36, 0  ;;  %v2474_v2 = vand.u32 3, %v2366_v53 }
  0xd4   :  { %v753_v37 = vshrl.u32 %v2388_v57, %v751_v55  ;;  %v756_v13 = vadd.s32 127, %v755_v15  ;;  %v841_v10 = vadd.s32 1, %v2455_v48  ;;  %v572_v17 = vsel %vm570_vm1, %v571_v16, %v2396_v23 }
  0xd5   :  { %v768_v54 = vsel %vm2424_vm6, 0, %v766_v42  ;;  %vm840_vm12 = vc.u32 %v2464_v3, %v2454_v29  ;;  %v901_v21 = vand.u32 31, %v899_v60  ;;  %v569_v53 = vsel %vm567_vm2, %v2377_v51, %v568_v19 }
  0xd6   :  { %v754_v11 = vor.u32 %v753_v37, %v752_v40  ;;  %v757_v57 = vshll.u32 %v756_v13, 23  ;;  %v842_v50 = vsel %vm840_vm12, %v841_v10, %v2455_v48  ;;  %v2493_v61 = vsel %vm459_vm7, nan, %v469_v9 }
  0xd7   :  { %v843_v23 = vadd.s32 %v842_v50, %v838_v43  ;;  %v902_v16 = vsub.s32 32, %v901_v21  ;;  %v2495_v35 = vshll.u32 %v895_v33, 8  ;;  %v772_v12 = vadd.s32 3, %v768_v54 }
  0xd8   :  { %v758_v25 = vor.u32 4788187, %v757_v57  ;;  %v761_v49 = vcvt.s32.f32 %v754_v11  ;;  %v2497_v58 = vshrl.u32 %v899_v60, 5  ;;  %v1715_v18 = vpop.eup %1714  ;;  %v573_v51 = vsel %vm566_vm8, %v569_v53, %v572_v17 }
  0xd9   :  { %v844_v19 = vadd.s32 536870912, %v843_v23  ;;  %v904_v39 = vshll.u32 %v1834_v22, %v901_v21  ;;  %v907_v36 = vshll.u32 %v1835_v24, %v901_v21  ;;  %v1717_v14 = vpop.eup %1716  ;;  %vm671_vm13 = vcmp.eq.s32.totalorder %v2474_v2, 0 }
  0xda   :  { %vm674_vm14 = vcmp.eq.s32.totalorder %v2474_v2, 2  ;;  %v759_v48 = vand.u32 2147483647, %v758_v25  ;;  %v905_v0 = vshrl.u32 %v1835_v24, %v902_v16  ;;  %v910_v42 = vshll.u32 %v1836_v26, %v901_v21 }
  0xdb   :  { %v913_v31 = vshll.u32 %v1837_v28, %v901_v21  ;;  %v845_v55 = vshrl.u32 %v844_v19, 30  ;;  %v908_v8 = vshrl.u32 %v1836_v26, %v902_v16  ;;  %v911_v40 = vshrl.u32 %v1837_v28, %v902_v16 }
  0xdc   :  { %v914_v15 = vshrl.u32 %v1838_v30, %v902_v16  ;;  %v2515_v9 = vsel %vm563_vm11, nan, %v573_v51  ;;  %v762_v43 = vmul.f32 %v761_v49, %v759_v48  ;;  %v2517_v33 = vand.u32 3, %v772_v12 }
  0xdd   :  { %vm919_vm0 = vcmp.lt.s32.totalorder %v2497_v58, 1  ;;  %v672_v24 = vxor.u32 2147483648, %v1717_v14  ;;  %v675_v60 = vxor.u32 2147483648, %v1715_v18  ;;  %vm785_vm1 = vcmp.lt.s32.totalorder %v2056_v1, 0 }
  0xde   :  { %v846_v26 = vshll.u32 %v845_v55, 30  ;;  %v903_v28 = vshrl.u32 %v1834_v22, %v902_v16  ;;  %vm670_vm2 = vcmp.lt.s32.totalorder %v2474_v2, 2  ;;  %v763_v37 = vxor.u32 2147483648, %v762_v43 }
  0xdf   :  { %v915_v32 = vor.u32 %v914_v15, %v913_v31  ;;  %v916_v13 = vshll.u32 %v1838_v30, %v901_v21  ;;  %v917_v10 = vshrl.u32 %v1839_v38, %v902_v16  ;;  %v906_v54 = vor.u32 %v905_v0, %v904_v39 }
  0xe0   :  { %v2527_v17 = vsub.s32 %v843_v23, %v846_v26  ;;  %v909_v53 = vor.u32 %v908_v8, %v907_v36  ;;  %v912_v11 = vor.u32 %v911_v40, %v910_v42  ;;  %v764_v57 = vsel %vm681_vm15, %v763_v37, %v762_v43 }
  0xe1   :  { %vm2533_vm3 = vcmp.le.f32.partialorder %v783_v52, 0.7853982  ;;  %v869_v50 = vsub.s32 4, %v845_v55  ;;  %v918_v25 = vor.u32 %v917_v10, %v916_v13  ;;  %vm922_vm4 = vcmp.lt.s32.totalorder %v2497_v58, 4  ;;  %v2606_v13 = vld [vmem:[#allocation3 + $0x8] sm:$0xff] }
  0xe2   :  { %v767_v30 = vsel %vm2424_vm6, %v2054_v59, %v764_v57  ;;  %v849_v38 = vsub.s32 0, %v2527_v17  ;;  %vm920_vm5 = vcmp.lt.s32.totalorder %v2497_v58, 2  ;;  %vm921_vm15 = vcmp.lt.s32.totalorder %v2497_v58, 3 }
  0xe3   :  { %1718 = vcosq.f32 %v767_v30  ;;  %v923_v52 = vsel %vm919_vm0, %v903_v28, %v906_v54  ;;  %v924_v21 = vsel %vm922_vm4, %v912_v11, 2102212464  ;;  %v928_v23 = vsel %vm922_vm4, %v915_v32, 920167782  ;;  %v2595_v28 = vld [vmem:[#allocation3] sm:$0xff] }
  0xe4   :  { %1720 = vsinq.f32 %v767_v30  ;;  %v1646_v34 = vmin.u32 %v849_v38, %v2527_v17  ;;  %v925_v16 = vsel %vm921_vm15, %v909_v53, %v924_v21  ;;  %v927_v49 = vsel %vm919_vm0, %v906_v54, %v909_v53  ;;  %v2623_v21 = vld [vmem:[#allocation3 + $0x18] sm:$0xff] }
  0xe5   :  { %v929_v12 = vsel %vm921_vm15, %v912_v11, %v928_v23  ;;  %v931_v51 = vsel %vm919_vm0, %v909_v53, %v912_v11  ;;  %v932_v19 = vsel %vm922_vm4, %v918_v25, 1326507024  ;;  %v992_v39 = vstv %s2511_s3  ;;  %v2617_v25 = vld [vmem:[#allocation3 + $0x30] sm:$0xff]  ;;  %s2906_s3 = sld [smem:[#allocation7 + $0x203]] }
  0xe6   :  { %v673_v36 = vsel %vm671_vm13, %v1715_v18, %v672_v24  ;;  %v676_v48 = vsel %vm674_vm14, %v675_v60, %v1717_v14  ;;  %v851_v0 = vclz %v1646_v34  ;;  %v997_v42 = vstv %s2520_s12  ;;  %s2937_s12 = sld [smem:[#allocation7 + $0x283]] }
  0xe7   :  { %v2573_v31 = vsel %vm785_vm1, %v869_v50, %v845_v55  ;;  %v926_v8 = vsel %vm920_vm5, %v923_v52, %v925_v16  ;;  %v930_v40 = vsel %vm920_vm5, %v927_v49, %v929_v12  ;;  %v933_v18 = vsel %vm921_vm15, %v915_v32, %v932_v19  ;;  %v2630_v19 = vld [vmem:[#allocation3 + $0x28] sm:$0xff] }
  0xe8   :  { %vm667_vm7 = vweird.f32 %v2052_v56  ;;  %v1647_v14 = vadd.s32 4294967294, %v851_v0  ;;  %v934_v15 = vsel %vm920_vm5, %v931_v51, %v933_v18  ;;  %v839_v55 = vadd.s32 %v2454_v29, %v2464_v3 }
  0xe9   :  { %v2585_v43 = vmul.u32.u64.low %v2495_v35, %v930_v40  ;;  %v2586_v24 = vmul.u32.u64.high %v2495_v35, %v930_v40, %v2585_v43  ;;  %v2592_v60 = vmul.u32.u64.low %v2495_v35, %v934_v15  ;;  %v2593_v26 = vmul.u32.u64.high %v2495_v35, %v934_v15, %v2592_v60 }
  0xea   :  { %v993_v37 = vmul.f32 %v2595_v28, %v992_v39  ;;  %v677_v58 = vsel %vm670_vm2, %v673_v36, %v676_v48  ;;  %vm775_vm6 = vcmp.eq.s32.totalorder %v2517_v33, 0  ;;  %vm778_vm8 = vcmp.eq.s32.totalorder %v2517_v33, 2 }
  0xeb   :  { %vm1648_vm10 = vcmp.lt.s32.totalorder %v1647_v14, 0  ;;  %v872_v29 = vsel %vm2533_vm3, 0, %v2573_v31  ;;  %v942_v3 = vmul.u32 %v2495_v35, %v926_v8  ;;  %v994_v10 = vmul.f32 %v2606_v13, %v992_v39 }
  0xec   :  { %v854_v32 = vsel %vm1648_vm10, 0, %v1647_v14  ;;  %v998_v2 = vmul.f32 %v997_v42, %v2052_v56  ;;  %v999_v54 = vmul.f32 %v997_v42, %v2054_v59  ;;  %v945_v50 = vadd.s32 1, %v2586_v24 }
  0xed   :  { %v855_v53 = vsub.s32 32, %v854_v32  ;;  %v856_v11 = vshll.u32 %v2527_v17, %v854_v32  ;;  %v859_v57 = vsub.s32 4294967266, %v854_v32  ;;  %vm774_vm11 = vcmp.lt.s32.totalorder %v2517_v33, 2 }
  0xee   :  { %vm944_vm9 = vc.u32 %v2593_v26, %v2585_v43  ;;  %v995_v35 = vmul.f32 %v2419_v27, %v992_v39  ;;  %v1000_v30 = vmul.f32 %v2617_v25, %v997_v42  ;;  %v1006_v38 = vstv %s2555_s13  ;;  %s2943_s13 = sld [smem:[#allocation7 + $0x4]] }
  0xef   :  { %v857_v59 = vshrl.u32 %v839_v55, %v855_v53  ;;  %v860_v52 = vadd.s32 127, %v859_v57  ;;  %vm889_vm12 = vcmp.lt.s32.totalorder %v2148_v44, 0  ;;  %v946_v17 = vsel %vm944_vm9, %v945_v50, %v2586_v24 }
  0xf0   :  { %v996_v23 = vmul.f32 %v2623_v21, %v992_v39  ;;  %v947_v34 = vadd.s32 %v946_v17, %v942_v3  ;;  %v1001_v16 = vmul.f32 %v997_v42, %v2148_v44  ;;  %v1002_v49 = vadd.f32 %v998_v2, %v993_v37  ;;  %v1719_v51 = vpop.eup %1718 }
  0xf1   :  { %v1015_v12 = vstv %s2569_s14  ;;  %vm771_vm13 = vweird.f32 %v2630_v19  ;;  %v858_v36 = vor.u32 %v857_v59, %v856_v11  ;;  %v861_v48 = vshll.u32 %v860_v52, 23  ;;  %v1721_v31 = vpop.eup %1720  ;;  %s2949_s14 = sld [smem:[#allocation7 + $0x84]] }
  0xf2   :  { %vm2635_vm14 = vcmp.le.f32.partialorder %v887_v4, 0.7853982  ;;  %v1003_v39 = vadd.f32 %v999_v54, %v994_v10  ;;  %v1007_v42 = vmul.f32 %v1006_v38, %v2032_v45  ;;  %v779_v8 = vxor.u32 2147483648, %v1719_v51 }
  0xf3   :  { %v948_v40 = vadd.s32 536870912, %v947_v34  ;;  %v1004_v18 = vadd.f32 %v1000_v30, %v995_v35  ;;  %v1008_v14 = vmul.f32 %v1006_v38, %v2036_v47  ;;  %v776_v15 = vxor.u32 2147483648, %v1721_v31 }
  0xf4   :  { %v862_v24 = vor.u32 4788187, %v861_v48  ;;  %v865_v55 = vcvt.s32.f32 %v858_v36  ;;  %v1009_v60 = vmul.f32 %v1006_v38, %v2040_v46  ;;  %v2646_v4 = vsel %vm667_vm7, nan, %v677_v58 }
  0xf5   :  { %v949_v37 = vshrl.u32 %v948_v40, 30  ;;  %v1005_v3 = vadd.f32 %v1001_v16, %v996_v23  ;;  %v1010_v32 = vmul.f32 %v1006_v38, %v2065_v5  ;;  %v876_v2 = vadd.s32 3, %v872_v29 }
  0xf6   :  { %v863_v10 = vand.u32 2147483647, %v862_v24  ;;  %v1011_v54 = vadd.f32 %v1007_v42, %v1002_v49  ;;  %v1016_v53 = vmul.f32 %v1015_v12, %v2069_v6  ;;  %v777_v11 = vsel %vm775_vm6, %v1719_v51, %v776_v15 }
  0xf7   :  { %v780_v57 = vsel %vm778_vm8, %v779_v8, %v1721_v31  ;;  %v950_v50 = vshll.u32 %v949_v37, 30  ;;  %v973_v56 = vsub.s32 4, %v949_v37  ;;  %v1012_v35 = vadd.f32 %v1008_v14, %v1003_v39 }
  0xf8   :  { %v866_v58 = vmul.f32 %v865_v55, %v863_v10  ;;  %v1013_v30 = vadd.f32 %v1009_v60, %v1004_v18  ;;  %v1017_v29 = vmul.f32 %v1015_v12, %v2073_v7  ;;  %v1014_v52 = vadd.f32 %v1010_v32, %v1005_v3 }
  0xf9   :  { %v2659_v38 = vsub.s32 %v947_v34, %v950_v50  ;;  %v974_v59 = vsel %vm889_vm12, %v973_v56, %v949_v37  ;;  %v1018_v17 = vmul.f32 %v1015_v12, %v2077_v63  ;;  %v781_v23 = vsel %vm774_vm11, %v777_v11, %v780_v57 }
  0xfa   :  { %v867_v16 = vxor.u32 2147483648, %v866_v58  ;;  %v1020_v49 = vadd.f32 %v1016_v53, %v1011_v54  ;;  %v1024_v51 = vstv %s2628_s15  ;;  %v976_v34 = vsel %vm2635_vm14, 0, %v974_v59  ;;  %s2955_s15 = sld [smem:[#allocation8 + $0x3]] }
  0xfb   :  { %v953_v36 = vsub.s32 0, %v2659_v38  ;;  %v1025_v48 = vmul.f32 %v1024_v51, %v2350_v41  ;;  %v2674_v39 = vstv %s2640_s16  ;;  %v1019_v31 = vmul.f32 %v1015_v12, %v2153_v62  ;;  %s2969_s16 = sld [smem:[#allocation7 + $0x104]] }
  0xfc   :  { %v868_v42 = vsel %vm785_vm1, %v867_v16, %v866_v58  ;;  %v1021_v8 = vadd.f32 %v1017_v29, %v1012_v35  ;;  %v1026_v33 = vmul.f32 %v1024_v51, %v2354_v20  ;;  %v2682_v40 = vsel %vm771_vm13, nan, %v781_v23  ;;  %v2723_v35 = vld [vmem:[#allocation3 + $0x20] sm:$0xff] }
  0xfd   :  { %v871_v18 = vsel %vm2533_vm3, %v2617_v25, %v868_v42  ;;  %v1650_v14 = vmin.u32 %v953_v36, %v2659_v38  ;;  %v2691_v1 = vstv %s3241_s4  ;;  %v980_v12 = vadd.s32 3, %v976_v34  ;;  %s2701_s4 = sld [smem:[#allocation10]]  ;;  %v2739_v42 = vld [vmem:[#allocation3 + $0x38] sm:$0xff] }
  0xfe   :  { %1722 = vcosq.f32 %v871_v18  ;;  %v1029_v15 = vadd.f32 %v1025_v48, %v1020_v49  ;;  %v1034_v24 = vmul.f32 %v2674_v39, %v2646_v4  ;;  %v2697_v22 = vand.u32 3, %v876_v2 }
  0xff   :  { %1724 = vsinq.f32 %v871_v18  ;;  %v943_v55 = vadd.s32 %v2585_v43, %v2593_v26  ;;  %v955_v60 = vclz %v1650_v14  ;;  %v1022_v37 = vadd.f32 %v1018_v17, %v1013_v30 }
 0x100   :  { %v2703_v3 = vadd.f32 %v1019_v31, %v1014_v52  ;;  %v1030_v32 = vadd.f32 %v1026_v33, %v1021_v8  ;;  %v1035_v10 = vmul.f32 %v2674_v39, %v2682_v40  ;;  %v1027_v53 = vmul.f32 %v1024_v51, %v2493_v61 }
 0x101   :  { %v1651_v54 = vadd.s32 4294967294, %v955_v60  ;;  %v1060_v11 = vstv %s2654_s17  ;;  %v1065_v2 = vstv %s2657_s18  ;;  %v2712_v57 = vand.u32 3, %v980_v12  ;;  %s2972_s17 = sld [smem:[#allocation10 + $0x180]] }
 0x102   :  { %v2715_v43 = vmul.f32 %v1024_v51, %v2515_v9  ;;  %v1038_v26 = vadd.f32 %v1034_v24, %v1029_v15  ;;  %v2718_v50 = vstv %s2664_s19  ;;  %vm882_vm0 = vcmp.eq.s32.totalorder %v2697_v22, 2  ;;  %s2981_s18 = sld [smem:[#allocation7 + $0x184]] }
 0x103   :  { %vm1652_vm1 = vcmp.lt.s32.totalorder %v1651_v54, 0  ;;  %v1061_v56 = vmul.f32 %v2595_v28, %v1060_v11  ;;  %v1062_v58 = vmul.f32 %v2606_v13, %v1060_v11  ;;  %v1066_v30 = vmul.f32 %v2723_v35, %v1065_v2  ;;  %s2991_s19 = sld [smem:[#allocation7 + $0x204]] }
 0x104   :  { %vm879_vm2 = vcmp.eq.s32.totalorder %v2697_v22, 0  ;;  %v958_v29 = vsel %vm1652_vm1, 0, %v1651_v54  ;;  %v1039_v59 = vadd.f32 %v1035_v10, %v1030_v32  ;;  %v1063_v52 = vmul.f32 %v2419_v27, %v1060_v11 }
 0x105   :  { %v1067_v17 = vmul.f32 %v2630_v19, %v1065_v2  ;;  %vm878_vm3 = vcmp.lt.s32.totalorder %v2697_v22, 2  ;;  %v959_v23 = vsub.s32 32, %v958_v29  ;;  %v960_v16 = vshll.u32 %v2659_v38, %v958_v29 }
 0x106   :  { %v963_v49 = vsub.s32 4294967266, %v958_v29  ;;  %v1068_v51 = vmul.f32 %v2617_v25, %v1065_v2  ;;  %vm875_vm4 = vweird.f32 %v2617_v25  ;;  %v2735_v36 = vadd.f32 %v1027_v53, %v1022_v37 }
 0x107   :  { %v1043_v34 = vadd.f32 %v2718_v50, %v1038_v26  ;;  %v1064_v48 = vmul.f32 %v2623_v21, %v1060_v11  ;;  %v1069_v31 = vmul.f32 %v2739_v42, %v1065_v2  ;;  %v961_v8 = vshrl.u32 %v943_v55, %v959_v23 }
 0x108   :  { %v964_v38 = vadd.s32 127, %v963_v49  ;;  %v1070_v33 = vadd.f32 %v1066_v30, %v1061_v56  ;;  %v1071_v18 = vadd.f32 %v1067_v17, %v1062_v58  ;;  %v1044_v14 = vadd.f32 %v2718_v50, %v1039_v59 }
 0x109   :  { %v2744_v12 = vstv %s2701_s4  ;;  %v1072_v15 = vadd.f32 %v1068_v51, %v1063_v52  ;;  %v1074_v24 = vstv %s2695_s22  ;;  %v962_v60 = vor.u32 %v961_v8, %v960_v16  ;;  %s3019_s22 = sld [smem:[#allocation7 + $0x85]] }
 0x10a   :  { %v965_v37 = vshll.u32 %v964_v38, 23  ;;  %v1075_v32 = vmul.f32 %v1074_v24, %v2032_v45  ;;  %v1076_v10 = vmul.f32 %v1074_v24, %v2036_v47  ;;  %v1047_v54 = vmax.f32 %v1043_v34, 0.0  ;;  %s3023_s4 = sld [smem:[#allocation8 + $0x4]] }
 0x10b   :  { %v1073_v55 = vadd.f32 %v1069_v31, %v1064_v48  ;;  %v1077_v53 = vmul.f32 %v1074_v24, %v2040_v46  ;;  %v1083_v11 = vstv %s2710_s23  ;;  %v1723_v2 = vpop.eup %1722  ;;  %v969_v56 = vcvt.s32.f32 %v962_v60  ;;  %s3036_s23 = sld [smem:[#allocation7 + $0x105]] }
 0x10c   :  { %v966_v26 = vor.u32 4788187, %v965_v37  ;;  %v1079_v58 = vadd.f32 %v1075_v32, %v1070_v33  ;;  %v1080_v30 = vadd.f32 %v1076_v10, %v1071_v18  ;;  %v1725_v29 = vpop.eup %1724  ;;  %v883_v59 = vxor.u32 2147483648, %v1723_v2 }
 0x10d   :  { %v1078_v52 = vmul.f32 %v1074_v24, %v2065_v5  ;;  %v1081_v17 = vadd.f32 %v1077_v53, %v1072_v15  ;;  %v1084_v23 = vmul.f32 %v1083_v11, %v2069_v6  ;;  %v880_v16 = vxor.u32 2147483648, %v1725_v29 }
 0x10e   :  { %v967_v49 = vand.u32 2147483647, %v966_v26  ;;  %v1085_v51 = vmul.f32 %v1083_v11, %v2073_v7  ;;  %v1086_v34 = vmul.f32 %v1083_v11, %v2077_v63  ;;  %v884_v48 = vsel %vm882_vm0, %v883_v59, %v1725_v29 }
 0x10f   :  { %v1048_v31 = vmax.f32 %v1044_v14, 0.0  ;;  %v1088_v8 = vadd.f32 %v1084_v23, %v1079_v58  ;;  %v1092_v38 = vstv %s2732_s24  ;;  %v881_v33 = vsel %vm879_vm2, %v1723_v2, %v880_v16  ;;  %s3041_s24 = sld [smem:[#allocation10 + $0x200]] }
 0x110   :  { %v970_v18 = vmul.f32 %v969_v56, %v967_v49  ;;  %v1089_v15 = vadd.f32 %v1085_v51, %v1080_v30  ;;  %v1090_v24 = vadd.f32 %v1086_v34, %v1081_v17  ;;  %v885_v60 = vsel %vm878_vm3, %v881_v33, %v884_v48 }
 0x111   :  { %v1052_v37 = vmul.f32 %v2744_v12, %v1047_v54  ;;  %v1093_v32 = vmul.f32 %v1092_v38, %v2350_v41  ;;  %v1094_v14 = vmul.f32 %v1092_v38, %v2354_v20  ;;  %v2775_v10 = vsel %vm875_vm4, nan, %v885_v60 }
 0x112   :  { %v971_v53 = vxor.u32 2147483648, %v970_v18  ;;  %v1082_v26 = vadd.f32 %v1078_v52, %v1073_v55  ;;  %v1095_v2 = vmul.f32 %v1092_v38, %v2493_v61  ;;  %v1036_v56 = vmul.f32 %v2674_v39, %v2775_v10 }
 0x113   :  { %v1097_v58 = vadd.f32 %v1093_v32, %v1088_v8  ;;  %v1098_v22 = vadd.f32 %v1094_v14, %v1089_v15  ;;  %v2781_v30 = vstv %s2749_s25  ;;  %v1087_v29 = vmul.f32 %v1083_v11, %v2153_v62  ;;  %s3047_s25 = sld [smem:[#allocation7 + $0x185]] }
 0x114   :  { %v972_v54 = vsel %vm889_vm12, %v971_v53, %v970_v18  ;;  %v1099_v59 = vadd.f32 %v1095_v2, %v1090_v24  ;;  %v1102_v55 = vmul.f32 %v2781_v30, %v2646_v4  ;;  %v1040_v17 = vadd.f32 %v1036_v56, %v2735_v36 }
 0x115   :  { %v975_v52 = vsel %vm2635_vm14, %v2739_v42, %v972_v54  ;;  %v1103_v44 = vmul.f32 %v2781_v30, %v2682_v40  ;;  %v1104_v11 = vmul.f32 %v2781_v30, %v2775_v10  ;;  %v1053_v23 = vmul.f32 %v2744_v12, %v1048_v31 }
 0x116   :  { %1726 = vcosq.f32 %v975_v52  ;;  %v1106_v16 = vadd.f32 %v1102_v55, %v1097_v58  ;;  %v2802_v49 = vstv %s2755_s2  ;;  %v1045_v0 = vadd.f32 %v2718_v50, %v1040_v17  ;;  %s3052_s2 = sld [smem:[#allocation7 + $0x205]] }
 0x117   :  { %1728 = vsinq.f32 %v975_v52  ;;  %v1107_v51 = vadd.f32 %v1103_v44, %v1098_v22  ;;  %v1108_v36 = vadd.f32 %v1104_v11, %v1099_v59  ;;  %v2811_v34 = vadd.f32 %v2715_v43, %v2703_v3 }
 0x118   :  { %v2814_v48 = vadd.f32 %v1052_v37, %v2691_v1  ;;  %v1128_v31 = vstv %s2759_s26  ;;  %v1133_v8 = vstv %s2764_s27  ;;  %v1091_v33 = vadd.f32 %v1087_v29, %v1082_v26  ;;  %s3059_s26 = sld [smem:[#allocation7 + $0x285]] }
 0x119   :  { %v1096_v18 = vmul.f32 %v1092_v38, %v2515_v9  ;;  %v2820_v15 = vadd.f32 %v2802_v49, %v1106_v16  ;;  %v1129_v24 = vmul.f32 %v2595_v28, %v1128_v31  ;;  %v1049_v60 = vmax.f32 %v1045_v0, 0.0  ;;  %s3077_s27 = sld [smem:[#allocation7 + $0x6]] }
 0x11a   :  { %v1130_v32 = vmul.f32 %v2606_v13, %v1128_v31  ;;  %v1131_v3 = vmul.f32 %v2419_v27, %v1128_v31  ;;  %v1132_v43 = vmul.f32 %v2623_v21, %v1128_v31  ;;  %vm986_vm5 = vcmp.eq.s32.totalorder %v2712_v57, 2 }
 0x11b   :  { %v2828_v37 = vadd.f32 %v1053_v23, %v2691_v1  ;;  %v2831_v38 = vadd.f32 %v2802_v49, %v1107_v51  ;;  %v2834_v14 = vadd.f32 %v2802_v49, %v1108_v36  ;;  %v1134_v53 = vmul.f32 %v2723_v35, %v1133_v8 }
 0x11c   :  { %vm983_vm15 = vcmp.eq.s32.totalorder %v2712_v57, 0  ;;  %v1135_v26 = vmul.f32 %v2630_v19, %v1133_v8  ;;  %v1136_v2 = vmul.f32 %v2617_v25, %v1133_v8  ;;  %v1137_v56 = vmul.f32 %v2739_v42, %v1133_v8 }
 0x11d   :  { %v1142_v58 = vstv %s2783_s28  ;;  %vm982_vm7 = vcmp.lt.s32.totalorder %v2712_v57, 2  ;;  %v2843_v22 = vadd.f32 %v1096_v18, %v1091_v33  ;;  %v1115_v54 = vmax.f32 %v2820_v15, 0.0  ;;  %s3082_s28 = sld [smem:[#allocation7 + $0x86]] }
 0x11e   :  { %v2847_v29 = vstv %s2790_s29  ;;  %v1138_v59 = vadd.f32 %v1134_v53, %v1129_v24  ;;  %vm979_vm6 = vweird.f32 %v2739_v42  ;;  %v1054_v55 = vmul.f32 %v2744_v12, %v1049_v60  ;;  %s3086_s29 = sld [smem:[#allocation8 + $0x5]] }
 0x11f   :  { %v1139_v52 = vadd.f32 %v1135_v26, %v1130_v32  ;;  %v1140_v17 = vadd.f32 %v1136_v2, %v1131_v3  ;;  %v1141_v44 = vadd.f32 %v1137_v56, %v1132_v43  ;;  %v1116_v11 = vmax.f32 %v2831_v38, 0.0 }
 0x120   :  { %v1117_v23 = vmax.f32 %v2834_v14, 0.0  ;;  %v1143_v16 = vmul.f32 %v1142_v58, %v2032_v45  ;;  %v1144_v0 = vmul.f32 %v1142_v58, %v2036_v47  ;;  %v1145_v51 = vmul.f32 %v1142_v58, %v2040_v46 }
 0x121   :  { %v1146_v36 = vmul.f32 %v1142_v58, %v2065_v5  ;;  %v1151_v31 = vstv %s2804_s30  ;;  %v1160_v8 = vstv %s2807_s6  ;;  %s3099_s30 = sld [smem:[#allocation7 + $0x106]] }
 0x122   :  { %v1147_v33 = vadd.f32 %v1143_v16, %v1138_v59  ;;  %v1148_v18 = vadd.f32 %v1144_v0, %v1139_v52  ;;  %v1152_v15 = vmul.f32 %v1151_v31, %v2069_v6  ;;  %v1153_v24 = vmul.f32 %v1151_v31, %v2073_v7  ;;  %s3104_s6 = sld [smem:[#allocation10 + $0x280]] }
 0x123   :  { %v1149_v60 = vadd.f32 %v1145_v51, %v1140_v17  ;;  %v1150_v32 = vadd.f32 %v1146_v36, %v1141_v44  ;;  %v1154_v3 = vmul.f32 %v1151_v31, %v2077_v63  ;;  %v1155_v43 = vmul.f32 %v1151_v31, %v2153_v62  ;;  %v1727_v38 = vpop.eup %1726 }
 0x124   :  { %v1156_v14 = vadd.f32 %v1152_v15, %v1147_v33  ;;  %v1157_v53 = vadd.f32 %v1153_v24, %v1148_v18  ;;  %v1161_v26 = vmul.f32 %v1160_v8, %v2350_v41  ;;  %v1162_v2 = vmul.f32 %v1160_v8, %v2354_v20  ;;  %v1729_v56 = vpop.eup %1728 }
 0x125   :  { %v987_v58 = vxor.u32 2147483648, %v1727_v38  ;;  %v1158_v59 = vadd.f32 %v1154_v3, %v1149_v60  ;;  %v1159_v52 = vadd.f32 %v1155_v43, %v1150_v32  ;;  %v1163_v17 = vmul.f32 %v1160_v8, %v2493_v61 }
 0x126   :  { %v984_v44 = vxor.u32 2147483648, %v1729_v56  ;;  %v1164_v16 = vmul.f32 %v1160_v8, %v2515_v9  ;;  %v1165_v0 = vadd.f32 %v1161_v26, %v1156_v14  ;;  %v1166_v51 = vadd.f32 %v1162_v2, %v1157_v53 }
 0x127   :  { %v988_v36 = vsel %vm986_vm5, %v987_v58, %v1729_v56  ;;  %v1120_v31 = vmul.f32 %v2847_v29, %v1115_v54  ;;  %v1167_v33 = vadd.f32 %v1163_v17, %v1158_v59  ;;  %v1169_v18 = vstv %s2849_s7  ;;  %s3110_s7 = sld [smem:[#allocation7 + $0x186]] }
 0x128   :  { %v985_v15 = vsel %vm983_vm15, %v1727_v38, %v984_v44  ;;  %v1058_v24 = vadd.f32 %v1054_v55, %v2691_v1  ;;  %v1170_v60 = vmul.f32 %v1169_v18, %v2646_v4  ;;  %v1171_v32 = vmul.f32 %v1169_v18, %v2682_v40 }
 0x129   :  { %v989_v8 = vsel %vm982_vm7, %v985_v15, %v988_v36  ;;  %v1168_v3 = vadd.f32 %v1164_v16, %v1159_v52  ;;  %v1172_v43 = vmul.f32 %v1169_v18, %v2775_v10  ;;  %v1178_v14 = vstv %s2857_s8  ;;  %s3119_s8 = sld [smem:[#allocation7 + $0x206]] }
 0x12a   :  { %v2892_v54 = vsel %vm979_vm6, nan, %v989_v8  ;;  %v1174_v53 = vadd.f32 %v1170_v60, %v1165_v0  ;;  %v1175_v26 = vadd.f32 %v1171_v32, %v1166_v51  ;;  %v1196_v38 = vstv %s2863_s9  ;;  %s3128_s9 = sld [smem:[#allocation7 + $0x286]] }
 0x12b   :  { %v1037_v55 = vmul.f32 %v2674_v39, %v2892_v54  ;;  %v1105_v57 = vmul.f32 %v2781_v30, %v2892_v54  ;;  %v1173_v2 = vmul.f32 %v1169_v18, %v2892_v54  ;;  %v1176_v56 = vadd.f32 %v1172_v43, %v1167_v33 }
 0x12c   :  { %v1121_v58 = vmul.f32 %v2847_v29, %v1116_v11  ;;  %v1122_v59 = vmul.f32 %v2847_v29, %v1117_v23  ;;  %v1179_v52 = vadd.f32 %v1178_v14, %v1174_v53  ;;  %v1180_v17 = vadd.f32 %v1178_v14, %v1175_v26 }
 0x12d   :  { %v1041_v44 = vadd.f32 %v1037_v55, %v2811_v34  ;;  %v1109_v39 = vadd.f32 %v1105_v57, %v2843_v22  ;;  %v1177_v16 = vadd.f32 %v1173_v2, %v1168_v3  ;;  %v2911_v30 = vstv %s2871_s10  ;;  %s3150_s10 = sld [smem:[#allocation7 + $0x7]] }
 0x12e   :  { %v2913_v0 = vadd.f32 %v1178_v14, %v1176_v56  ;;  %v1197_v51 = vmul.f32 %v2595_v28, %v1196_v38  ;;  %v1198_v36 = vmul.f32 %v2606_v13, %v1196_v38  ;;  %v1201_v11 = vstv %s2874_s11  ;;  %s3155_s11 = sld [smem:[#allocation7 + $0x87]] }
 0x12f   :  { %v1046_v23 = vadd.f32 %v2718_v50, %v1041_v44  ;;  %v1114_v33 = vadd.f32 %v2802_v49, %v1109_v39  ;;  %v1183_v18 = vmax.f32 %v1179_v52, 0.0  ;;  %v1184_v15 = vmax.f32 %v1180_v17, 0.0 }
 0x130   :  { %v1199_v34 = vmul.f32 %v2419_v27, %v1196_v38  ;;  %v1200_v22 = vmul.f32 %v2623_v21, %v1196_v38  ;;  %v1202_v60 = vmul.f32 %v2723_v35, %v1201_v11  ;;  %v1203_v32 = vmul.f32 %v2630_v19, %v1201_v11 }
 0x131   :  { %v2925_v8 = vadd.f32 %v1120_v31, %v2814_v48  ;;  %v2928_v3 = vadd.f32 %v1121_v58, %v2828_v37  ;;  %v2930_v43 = vadd.f32 %v1178_v14, %v1177_v16  ;;  %v2932_v50 = vadd.f32 %v1122_v59, %v1058_v24 }
 0x132   :  { %v1185_v27 = vmax.f32 %v2913_v0, 0.0  ;;  %v1204_v49 = vmul.f32 %v2617_v25, %v1201_v11  ;;  %v1205_v53 = vmul.f32 %v2739_v42, %v1201_v11  ;;  %v1050_v48 = vmax.f32 %v1046_v23, 0.0 }
 0x133   :  { %v1118_v31 = vmax.f32 %v1114_v33, 0.0  ;;  %v1188_v37 = vmul.f32 %v2911_v30, %v1183_v18  ;;  %v2941_v14 = vmul.f32 %v2911_v30, %v1184_v15  ;;  %v1206_v26 = vadd.f32 %v1202_v60, %v1197_v51 }
 0x134   :  { %v1207_v24 = vadd.f32 %v1203_v32, %v1198_v36  ;;  %v1208_v38 = vadd.f32 %v1204_v49, %v1199_v34  ;;  %v1209_v55 = vadd.f32 %v1205_v53, %v1200_v22  ;;  %v1186_v57 = vmax.f32 %v2930_v43, 0.0 }
 0x135   :  { %v1210_v2 = vstv %s2895_s0  ;;  %v1219_v56 = vstv %s2902_s1  ;;  %v1228_v58 = vstv %s2906_s3  ;;  %v1055_v39 = vmul.f32 %v2744_v12, %v1050_v48  ;;  %s3159_s0 = sld [smem:[#allocation8 + $0x6]] }
 0x136   :  { %v1211_v59 = vmul.f32 %v1210_v2, %v2032_v45  ;;  %v1212_v52 = vmul.f32 %v1210_v2, %v2036_v47  ;;  %v1213_v17 = vmul.f32 %v1210_v2, %v2040_v46  ;;  %v1214_v44 = vmul.f32 %v1210_v2, %v2065_v5  ;;  %s3172_s1 = sld [smem:[#allocation7 + $0x107]] }
 0x137   :  { %v1220_v16 = vmul.f32 %v1219_v56, %v2069_v6  ;;  %v1221_v0 = vmul.f32 %v1219_v56, %v2073_v7  ;;  %v1222_v51 = vmul.f32 %v1219_v56, %v2077_v63  ;;  %v1123_v18 = vmul.f32 %v2847_v29, %v1118_v31  ;;  %s3177_s3 = sld [smem:[#allocation10 + $0x300]] }
 0x138   :  { %v1215_v36 = vadd.f32 %v1211_v59, %v1206_v26  ;;  %v1216_v11 = vadd.f32 %v1212_v52, %v1207_v24  ;;  %v1217_v23 = vadd.f32 %v1213_v17, %v1208_v38  ;;  %v1218_v33 = vadd.f32 %v1214_v44, %v1209_v55 }
 0x139   :  { %v1223_v15 = vmul.f32 %v1219_v56, %v2153_v62  ;;  %v1229_v34 = vmul.f32 %v1228_v58, %v2350_v41  ;;  %v1230_v22 = vmul.f32 %v1228_v58, %v2354_v20  ;;  %v1231_v43 = vmul.f32 %v1228_v58, %v2493_v61 }
 0x13a   :  { %v1224_v12 = vadd.f32 %v1220_v16, %v1215_v36  ;;  %v1225_v60 = vadd.f32 %v1221_v0, %v1216_v11  ;;  %v1226_v32 = vadd.f32 %v1222_v51, %v1217_v23  ;;  %v1059_v49 = vadd.f32 %v1055_v39, %v2691_v1  ;;  %v2988_v23 = vld [vmem:[#allocation3 + $0x10] sm:$0xff] }
 0x13b   :  { %v1227_v53 = vadd.f32 %v1223_v15, %v1218_v33  ;;  %v1232_v48 = vmul.f32 %v1228_v58, %v2515_v9  ;;  %v1237_v26 = vstv %s2937_s12  ;;  %v1190_v58 = vmul.f32 %v2911_v30, %v1185_v27  ;;  %s3182_s12 = sld [smem:[#allocation7 + $0x187]] }
 0x13c   :  { %v1233_v29 = vadd.f32 %v1229_v34, %v1224_v12  ;;  %v1234_v31 = vadd.f32 %v1230_v22, %v1225_v60  ;;  %v1235_v24 = vadd.f32 %v1231_v43, %v1226_v32  ;;  %v1238_v38 = vmul.f32 %v1237_v26, %v2646_v4 }
 0x13d   :  { %v1236_v55 = vadd.f32 %v1232_v48, %v1227_v53  ;;  %v1239_v2 = vmul.f32 %v1237_v26, %v2682_v40  ;;  %v1240_v1 = vmul.f32 %v1237_v26, %v2775_v10  ;;  %v1241_v56 = vmul.f32 %v1237_v26, %v2892_v54 }
 0x13e   :  { %v1242_v59 = vadd.f32 %v1238_v38, %v1233_v29  ;;  %v1264_v52 = vstv %s2943_s13  ;;  %v1269_v17 = vstv %s2949_s14  ;;  %v1246_v0 = vstv %s2955_s15  ;;  %s3185_s13 = sld [smem:[#allocation7 + $0x207]] }
 0x13f   :  { %v1243_v44 = vadd.f32 %v1239_v2, %v1234_v31  ;;  %v1244_v39 = vadd.f32 %v1240_v1, %v1235_v24  ;;  %v1245_v16 = vadd.f32 %v1241_v56, %v1236_v55  ;;  %v2984_v51 = vadd.f32 %v1188_v37, %v2925_v8  ;;  %s3190_s14 = sld [smem:[#allocation7 + $0x287]] }
 0x140   :  { %v1265_v36 = vmul.f32 %v2595_v28, %v1264_v52  ;;  %v1266_v11 = vmul.f32 %v2606_v13, %v1264_v52  ;;  %v1267_v27 = vmul.f32 %v2988_v23, %v1264_v52  ;;  %v1127_v33 = vadd.f32 %v1123_v18, %v1059_v49  ;;  %s3197_s15 = sld [smem:[#allocation8 + $0x7]] }
 0x141   :  { %v1191_v15 = vmul.f32 %v2911_v30, %v1186_v57  ;;  %v1268_v34 = vmul.f32 %v2623_v21, %v1264_v52  ;;  %v1270_v22 = vmul.f32 %v2723_v35, %v1269_v17  ;;  %v1247_v8 = vadd.f32 %v1246_v0, %v1242_v59 }
 0x142   :  { %v1271_v37 = vmul.f32 %v2630_v19, %v1269_v17  ;;  %v1272_v12 = vmul.f32 %v2617_v25, %v1269_v17  ;;  %v1273_v60 = vmul.f32 %v2739_v42, %v1269_v17  ;;  %v3003_v18 = vadd.f32 %v2941_v14, %v2928_v3 }
 0x143   :  { %v1248_v30 = vadd.f32 %v1246_v0, %v1243_v44  ;;  %v1249_v57 = vadd.f32 %v1246_v0, %v1244_v39  ;;  %v3005_v32 = vadd.f32 %v1246_v0, %v1245_v16  ;;  %v3008_v43 = vadd.f32 %v1190_v58, %v2932_v50 }
 0x144   :  { %v1274_v49 = vadd.f32 %v1270_v22, %v1265_v36  ;;  %v1275_v53 = vadd.f32 %v1271_v37, %v1266_v11  ;;  %v1276_v48 = vadd.f32 %v1272_v12, %v1267_v27  ;;  %v3010_v26 = vadd.f32 %v1191_v15, %v1127_v33 }
 0x145   :  { %v1255_v29 = vstv %s2972_s17  ;;  %v1277_v31 = vadd.f32 %v1273_v60, %v1268_v34  ;;  %v1278_v24 = vstv %s2969_s16  ;;  %v1251_v3 = vmax.f32 %v1247_v8, 0.0  ;;  %s3217_s16 = sld [smem:[#allocation10 + $0x380]]  ;;  %s1840_s17 = smov [#allocation11]  }
 0x146   :  { %v1279_v14 = vmul.f32 %v1278_v24, %v2032_v45  ;;  %v1280_v38 = vmul.f32 %v1278_v24, %v2036_v47  ;;  %v1281_v55 = vmul.f32 %v1278_v24, %v2040_v46  ;;  %v1252_v50 = vmax.f32 %v1248_v30, 0.0 }
 0x147   :  { %v1253_v2 = vmax.f32 %v1249_v57, 0.0  ;;  %v1254_v1 = vmax.f32 %v3005_v32, 0.0  ;;  %v1282_v56 = vmul.f32 %v1278_v24, %v2065_v5  ;;  %v1287_v17 = vstv %s2981_s18  ;;  %s1548_s18 = sshll.u32 %s1840_s17, 4  ;;  %s1549_s18 = int_to_ptr.vmem [resolvable:$true] %s1548_s18 }
 0x148   :  { %v1283_v58 = vadd.f32 %v1279_v14, %v1274_v49  ;;  %v1284_v59 = vadd.f32 %v1280_v38, %v1275_v53  ;;  %v1285_v52 = vadd.f32 %v1281_v55, %v1276_v48  ;;  %v1288_v39 = vmul.f32 %v1287_v17, %v2069_v6  ;;  %p1805_p7 = scmp.lt.s32.totalorder %s1549_s18, %s1549_s18 }
 0x149   :  { %v1286_v44 = vadd.f32 %v1282_v56, %v1277_v31  ;;  %v1289_v16 = vmul.f32 %v1287_v17, %v2073_v7  ;;  %v1290_v0 = vmul.f32 %v1287_v17, %v2077_v63  ;;  %v1256_v36 = vmul.f32 %v1255_v29, %v1251_v3 }
 0x14a   :  { %v1291_v11 = vmul.f32 %v1287_v17, %v2153_v62  ;;  %v1296_v27 = vstv %s2991_s19  ;;  %v1305_v33 = vstv %s2996_s20  ;;  %v1292_v15 = vadd.f32 %v1288_v39, %v1283_v58  ;;  %s1800_s19 = scalar_lea.vmem %s1549_s18, 512 }
 0x14b   :  { %v1293_v34 = vadd.f32 %v1289_v16, %v1284_v59  ;;  %v1294_v22 = vadd.f32 %v1290_v0, %v1285_v52  ;;  %v1297_v8 = vmul.f32 %v1296_v27, %v2350_v41  ;;  %v1298_v12 = vmul.f32 %v1296_v27, %v2354_v20  ;;  %p1801_p6 = scmp.ne.s32.totalorder %s1549_s18, %s1800_s19  ;;  %p1806_p8 = scmp.lt.s32.totalorder %s1800_s19, %s1800_s19 }
 0x14c   :  { %v1295_v37 = vadd.f32 %v1291_v11, %v1286_v44  ;;  %v1299_v60 = vmul.f32 %v1296_v27, %v2493_v61  ;;  %v1300_v30 = vmul.f32 %v1296_v27, %v2515_v9  ;;  %v1306_v32 = vmul.f32 %v1305_v33, %v2646_v4 }
 0x14d   :  { %v1301_v57 = vadd.f32 %v1297_v8, %v1292_v15  ;;  %v1307_v49 = vmul.f32 %v1305_v33, %v2682_v40  ;;  %v1308_v53 = vmul.f32 %v1305_v33, %v2775_v10  ;;  %v1302_v48 = vadd.f32 %v1298_v12, %v1293_v34  ;;  %p1807_p9 = por %p1806_p8, %p1805_p7 }
 0x14e   :  { %v1303_v31 = vadd.f32 %v1299_v60, %v1294_v22  ;;  %v1304_v24 = vadd.f32 %v1300_v30, %v1295_v37  ;;  %v1309_v3 = vmul.f32 %v1305_v33, %v2892_v54  ;;  %v1257_v14 = vmul.f32 %v1255_v29, %v1252_v50 }
 0x14f   :  { %v1310_v38 = vadd.f32 %v1306_v32, %v1301_v57  ;;  %v1332_v55 = vstv %s3014_s21  ;;  %v1337_v56 = vstv %s3019_s22  ;;  %v1311_v58 = vadd.f32 %v1307_v49, %v1302_v48  ;;  %p1808_p10 = pnand %p1807_p9, %p1801_p6 }
 0x150   :  { %v1312_v59 = vadd.f32 %v1308_v53, %v1303_v31  ;;  %v1313_v52 = vadd.f32 %v1309_v3, %v1304_v24  ;;  %v1314_v17 = vstv %s3023_s4  ;;  %v1258_v44 = vmul.f32 %v1255_v29, %v1253_v2 }
 0x151   :  { %v1333_v39 = vmul.f32 %v2595_v28, %v1332_v55  ;;  %v1334_v16 = vmul.f32 %v2606_v13, %v1332_v55  ;;  %v1335_v0 = vmul.f32 %v2988_v23, %v1332_v55  ;;  %v1259_v11 = vmul.f32 %v1255_v29, %v1254_v1 }
 0x152   :  { %v3055_v50 = vadd.f32 %v1256_v36, %v2984_v51  ;;  %v1336_v27 = vmul.f32 %v2623_v21, %v1332_v55  ;;  %v1338_v33 = vmul.f32 %v2723_v35, %v1337_v56  ;;  %v1315_v2 = vadd.f32 %v1314_v17, %v1310_v38 }
 0x153   :  { %v1339_v28 = vmul.f32 %v2630_v19, %v1337_v56  ;;  %v1340_v13 = vmul.f32 %v2617_v25, %v1337_v56  ;;  %v1341_v15 = vmul.f32 %v2739_v42, %v1337_v56  ;;  %v3065_v29 = vadd.f32 %v1257_v14, %v3003_v18 }
 0x154   :  { %v1316_v51 = vadd.f32 %v1314_v17, %v1311_v58  ;;  %v1317_v1 = vadd.f32 %v1314_v17, %v1312_v59  ;;  %v3067_v36 = vadd.f32 %v1314_v17, %v1313_v52  ;;  %v3070_v21 = vadd.f32 %v1258_v44, %v3008_v43 }
 0x155   :  { %v1342_v34 = vadd.f32 %v1338_v33, %v1333_v39  ;;  %v1343_v22 = vadd.f32 %v1339_v28, %v1334_v16  ;;  %v1344_v8 = vadd.f32 %v1340_v13, %v1335_v0  ;;  %v3073_v37 = vadd.f32 %v1259_v11, %v3010_v26 }
 0x156   :  { %v1323_v19 = vstv %s3041_s24  ;;  %v1345_v25 = vadd.f32 %v1341_v15, %v1336_v27  ;;  %v1346_v12 = vstv %s3036_s23  ;;  %v1319_v18 = vmax.f32 %v1315_v2, 0.0 }
 0x157   :  { %v1347_v60 = vmul.f32 %v1346_v12, %v2032_v45  ;;  %v1348_v30 = vmul.f32 %v1346_v12, %v2036_v47  ;;  %v1349_v43 = vmul.f32 %v1346_v12, %v2040_v46  ;;  %v1320_v57 = vmax.f32 %v1316_v51, 0.0 }
 0x158   :  { %v1321_v26 = vmax.f32 %v1317_v1, 0.0  ;;  %v1322_v32 = vmax.f32 %v3067_v36, 0.0  ;;  %v1350_v49 = vmul.f32 %v1346_v12, %v2065_v5  ;;  %v1355_v24 = vstv %s3047_s25 }
 0x159   :  { %v1351_v53 = vadd.f32 %v1347_v60, %v1342_v34  ;;  %v1352_v48 = vadd.f32 %v1348_v30, %v1343_v22  ;;  %v1353_v31 = vadd.f32 %v1349_v43, %v1344_v8  ;;  %v1356_v14 = vmul.f32 %v1355_v24, %v2069_v6 }
 0x15a   :  { %v1354_v3 = vadd.f32 %v1350_v49, %v1345_v25  ;;  %v1357_v38 = vmul.f32 %v1355_v24, %v2073_v7  ;;  %v1358_v55 = vmul.f32 %v1355_v24, %v2077_v63  ;;  %v1324_v56 = vmul.f32 %v1323_v19, %v1319_v18 }
 0x15b   :  { %v1359_v58 = vmul.f32 %v1355_v24, %v2153_v62  ;;  %v1364_v59 = vstv %s3052_s2  ;;  %v1373_v52 = vstv %s3059_s26  ;;  %v1360_v17 = vadd.f32 %v1356_v14, %v1351_v53  ;;  %v3112_v53 = vld [vmem:[#allocation3] sm:$0xff] }
 0x15c   :  { %v1361_v44 = vadd.f32 %v1357_v38, %v1352_v48  ;;  %v1362_v39 = vadd.f32 %v1358_v55, %v1353_v31  ;;  %v1365_v16 = vmul.f32 %v1364_v59, %v2350_v41  ;;  %v1366_v11 = vmul.f32 %v1364_v59, %v2354_v20  ;;  %v3115_v31 = vld [vmem:[#allocation3 + $0x8] sm:$0xff]  ;;  %v3124_v38 = vld [vmem:[#allocation3 + $0x18] sm:$0xff] }
 0x15d   :  { %v1363_v0 = vadd.f32 %v1359_v58, %v1354_v3  ;;  %v1367_v27 = vmul.f32 %v1364_v59, %v2493_v61  ;;  %v1368_v33 = vmul.f32 %v1364_v59, %v2515_v9  ;;  %v1374_v28 = vmul.f32 %v1373_v52, %v2646_v4  ;;  %v3130_v59 = vld [vmem:[#allocation3 + $0x28] sm:$0xff] }
 0x15e   :  { %v1369_v2 = vadd.f32 %v1365_v16, %v1360_v17  ;;  %v1375_v13 = vmul.f32 %v1373_v52, %v2682_v40  ;;  %v1376_v15 = vmul.f32 %v1373_v52, %v2775_v10  ;;  %v1370_v51 = vadd.f32 %v1366_v11, %v1361_v44  ;;  %v3133_v17 = vld [vmem:[#allocation3 + $0x30] sm:$0xff] }
 0x15f   :  { %v1371_v1 = vadd.f32 %v1367_v27, %v1362_v39  ;;  %v1372_v36 = vadd.f32 %v1368_v33, %v1363_v0  ;;  %v1377_v34 = vmul.f32 %v1373_v52, %v2892_v54  ;;  %v1325_v22 = vmul.f32 %v1323_v19, %v1320_v57 }
 0x160   :  { %v1378_v8 = vadd.f32 %v1374_v28, %v1369_v2  ;;  %v1400_v25 = vstv %s3077_s27  ;;  %v1405_v12 = vstv %s3082_s28  ;;  %v1379_v18 = vadd.f32 %v1375_v13, %v1370_v51 }
 0x161   :  { %v1380_v60 = vadd.f32 %v1376_v15, %v1371_v1  ;;  %v1381_v30 = vadd.f32 %v1377_v34, %v1372_v36  ;;  %v1382_v43 = vstv %s3086_s29  ;;  %v1326_v49 = vmul.f32 %v1323_v19, %v1321_v26 }
 0x162   :  { %v1401_v48 = vmul.f32 %v3112_v53, %v1400_v25  ;;  %v1402_v24 = vmul.f32 %v3115_v31, %v1400_v25  ;;  %v1403_v57 = vmul.f32 %v2988_v23, %v1400_v25  ;;  %v1327_v3 = vmul.f32 %v1323_v19, %v1322_v32 }
 0x163   :  { %v3122_v14 = vadd.f32 %v1324_v56, %v3055_v50  ;;  %v1404_v26 = vmul.f32 %v3124_v38, %v1400_v25  ;;  %v1406_v55 = vmul.f32 %v2723_v35, %v1405_v12  ;;  %v1383_v58 = vadd.f32 %v1382_v43, %v1378_v8 }
 0x164   :  { %v1407_v52 = vmul.f32 %v3130_v59, %v1405_v12  ;;  %v1408_v50 = vmul.f32 %v3133_v17, %v1405_v12  ;;  %v1409_v19 = vmul.f32 %v2739_v42, %v1405_v12  ;;  %v3138_v32 = vadd.f32 %v1325_v22, %v3065_v29 }
 0x165   :  { %v1384_v56 = vadd.f32 %v1382_v43, %v1379_v18  ;;  %v1385_v44 = vadd.f32 %v1382_v43, %v1380_v60  ;;  %v3140_v39 = vadd.f32 %v1382_v43, %v1381_v30  ;;  %v3143_v16 = vadd.f32 %v1326_v49, %v3070_v21 }
 0x166   :  { %v1410_v0 = vadd.f32 %v1406_v55, %v1401_v48  ;;  %v1411_v11 = vadd.f32 %v1407_v52, %v1402_v24  ;;  %v1412_v27 = vadd.f32 %v1408_v50, %v1403_v57  ;;  %v3146_v33 = vadd.f32 %v1327_v3, %v3073_v37 }
 0x167   :  { %v1391_v2 = vstv %s3104_s6  ;;  %v1413_v28 = vadd.f32 %v1409_v19, %v1404_v26  ;;  %v1414_v13 = vstv %s3099_s30  ;;  %v1387_v29 = vmax.f32 %v1383_v58, 0.0 }
 0x168   :  { %v1415_v15 = vmul.f32 %v1414_v13, %v2032_v45  ;;  %v1416_v51 = vmul.f32 %v1414_v13, %v2036_v47  ;;  %v1417_v21 = vmul.f32 %v1414_v13, %v2040_v46  ;;  %v1388_v1 = vmax.f32 %v1384_v56, 0.0 }
 0x169   :  { %v1389_v37 = vmax.f32 %v1385_v44, 0.0  ;;  %v1390_v36 = vmax.f32 %v3140_v39, 0.0  ;;  %v1418_v34 = vmul.f32 %v1414_v13, %v2065_v5  ;;  %v1423_v12 = vstv %s3110_s7 }
 0x16a   :  { %v1419_v22 = vadd.f32 %v1415_v15, %v1410_v0  ;;  %v1420_v8 = vadd.f32 %v1416_v51, %v1411_v11  ;;  %v1421_v25 = vadd.f32 %v1417_v21, %v1412_v27  ;;  %v1424_v60 = vmul.f32 %v1423_v12, %v2069_v6 }
 0x16b   :  { %v1422_v18 = vadd.f32 %v1418_v34, %v1413_v28  ;;  %v1425_v30 = vmul.f32 %v1423_v12, %v2073_v7  ;;  %v1426_v43 = vmul.f32 %v1423_v12, %v2077_v63  ;;  %v1392_v49 = vmul.f32 %v1391_v2, %v1387_v29 }
 0x16c   :  { %v1427_v48 = vmul.f32 %v1423_v12, %v2153_v62  ;;  %v1432_v24 = vstv %s3119_s8  ;;  %v1441_v57 = vstv %s3128_s9  ;;  %v1428_v3 = vadd.f32 %v1424_v60, %v1419_v22 }
 0x16d   :  { %v1429_v26 = vadd.f32 %v1425_v30, %v1420_v8  ;;  %v1430_v55 = vadd.f32 %v1426_v43, %v1421_v25  ;;  %v1433_v58 = vmul.f32 %v1432_v24, %v2350_v41  ;;  %v1434_v50 = vmul.f32 %v1432_v24, %v2354_v20 }
 0x16e   :  { %v1431_v52 = vadd.f32 %v1427_v48, %v1422_v18  ;;  %v1435_v19 = vmul.f32 %v1432_v24, %v2493_v61  ;;  %v1436_v56 = vmul.f32 %v1432_v24, %v2515_v9  ;;  %v1442_v39 = vmul.f32 %v1441_v57, %v2646_v4 }
 0x16f   :  { %v1437_v44 = vadd.f32 %v1433_v58, %v1428_v3  ;;  %v1443_v0 = vmul.f32 %v1441_v57, %v2682_v40  ;;  %v1444_v11 = vmul.f32 %v1441_v57, %v2775_v10  ;;  %v1438_v27 = vadd.f32 %v1434_v50, %v1429_v26 }
 0x170   :  { %v1439_v28 = vadd.f32 %v1435_v19, %v1430_v55  ;;  %v1440_v13 = vadd.f32 %v1436_v56, %v1431_v52  ;;  %v1445_v29 = vmul.f32 %v1441_v57, %v2892_v54  ;;  %v1393_v15 = vmul.f32 %v1391_v2, %v1388_v1 }
 0x171   :  { %v1446_v51 = vadd.f32 %v1442_v39, %v1437_v44  ;;  %v1468_v21 = vstv %s3150_s10  ;;  %v1473_v34 = vstv %s3155_s11  ;;  %v1447_v22 = vadd.f32 %v1443_v0, %v1438_v27 }
 0x172   :  { %v1448_v8 = vadd.f32 %v1444_v11, %v1439_v28  ;;  %v1449_v25 = vadd.f32 %v1445_v29, %v1440_v13  ;;  %v1450_v12 = vstv %s3159_s0  ;;  %v1394_v18 = vmul.f32 %v1391_v2, %v1389_v37 }
 0x173   :  { %v1469_v60 = vmul.f32 %v3112_v53, %v1468_v21  ;;  %v1470_v30 = vmul.f32 %v3115_v31, %v1468_v21  ;;  %v1471_v43 = vmul.f32 %v2988_v23, %v1468_v21  ;;  %v1395_v1 = vmul.f32 %v1391_v2, %v1390_v36 }
 0x174   :  { %v3193_v48 = vadd.f32 %v1392_v49, %v3122_v14  ;;  %v1472_v24 = vmul.f32 %v3124_v38, %v1468_v21  ;;  %v1474_v57 = vmul.f32 %v2723_v35, %v1473_v34  ;;  %v1451_v37 = vadd.f32 %v1450_v12, %v1446_v51 }
 0x175   :  { %v1475_v53 = vmul.f32 %v3130_v59, %v1473_v34  ;;  %v1476_v31 = vmul.f32 %v3133_v17, %v1473_v34  ;;  %v1477_v23 = vmul.f32 %v2739_v42, %v1473_v34  ;;  %v3203_v2 = vadd.f32 %v1393_v15, %v3138_v32 }
 0x176   :  { %v1452_v14 = vadd.f32 %v1450_v12, %v1447_v22  ;;  %v1453_v36 = vadd.f32 %v1450_v12, %v1448_v8  ;;  %v1454_v49 = vadd.f32 %v1450_v12, %v1449_v25  ;;  %v1398_v38 = vadd.f32 %v1394_v18, %v3143_v16 }
 0x177   :  { %v1478_v3 = vadd.f32 %v1474_v57, %v1469_v60  ;;  %v1479_v35 = vadd.f32 %v1475_v53, %v1470_v30  ;;  %v1480_v26 = vadd.f32 %v1476_v31, %v1471_v43  ;;  %v1399_v55 = vadd.f32 %v1395_v1, %v3146_v33 }
 0x178   :  { %v1459_v58 = vstv %s3177_s3  ;;  %v1481_v59 = vadd.f32 %v1477_v23, %v1472_v24  ;;  %v1482_v52 = vstv %s3172_s1  ;;  %v1455_v17 = vmax.f32 %v1451_v37, 0.0 }
 0x179   :  { %v1483_v42 = vmul.f32 %v1482_v52, %v2032_v45  ;;  %v1484_v32 = vmul.f32 %v1482_v52, %v2036_v47  ;;  %v1485_v50 = vmul.f32 %v1482_v52, %v2040_v46  ;;  %v1456_v19 = vmax.f32 %v1452_v14, 0.0 }
 0x17a   :  { %v1457_v16 = vmax.f32 %v1453_v36, 0.0  ;;  %v1458_v56 = vmax.f32 %v1454_v49, 0.0  ;;  %v1486_v44 = vmul.f32 %v1482_v52, %v2065_v5  ;;  %v1491_v11 = vstv %s3182_s12 }
 0x17b   :  { %v1487_v39 = vadd.f32 %v1483_v42, %v1478_v3  ;;  %v1488_v33 = vadd.f32 %v1484_v32, %v1479_v35  ;;  %v1489_v0 = vadd.f32 %v1485_v50, %v1480_v26  ;;  %v1492_v28 = vmul.f32 %v1491_v11, %v2069_v6 }
 0x17c   :  { %v1490_v27 = vadd.f32 %v1486_v44, %v1481_v59  ;;  %v1493_v45 = vmul.f32 %v1491_v11, %v2073_v7  ;;  %v1494_v47 = vmul.f32 %v1491_v11, %v2077_v63  ;;  %v1495_v46 = vmul.f32 %v1491_v11, %v2153_v62 }
 0x17d   :  { %v1500_v13 = vstv %s3185_s13  ;;  %v1509_v29 = vstv %s3190_s14  ;;  %v1518_v15 = vstv %s3197_s15  ;;  %v1496_v51 = vadd.f32 %v1492_v28, %v1487_v39 }
 0x17e   :  { %v1497_v5 = vadd.f32 %v1493_v45, %v1488_v33  ;;  %v1498_v21 = vadd.f32 %v1494_v47, %v1489_v0  ;;  %v1501_v34 = vmul.f32 %v1500_v13, %v2350_v41  ;;  %v1499_v22 = vadd.f32 %v1495_v46, %v1490_v27 }
 0x17f   :  { %v1502_v8 = vmul.f32 %v1500_v13, %v2354_v20  ;;  %v1503_v6 = vmul.f32 %v1500_v13, %v2493_v61  ;;  %v1504_v7 = vmul.f32 %v1500_v13, %v2515_v9  ;;  %v1510_v25 = vmul.f32 %v1509_v29, %v2646_v4 }
 0x180   :  { %v1505_v63 = vadd.f32 %v1501_v34, %v1496_v51  ;;  %v1511_v62 = vmul.f32 %v1509_v29, %v2682_v40  ;;  %v1512_v12 = vmul.f32 %v1509_v29, %v2775_v10  ;;  %v1513_v41 = vmul.f32 %v1509_v29, %v2892_v54 }
 0x181   :  { %v1506_v18 = vadd.f32 %v1502_v8, %v1497_v5  ;;  %v1507_v60 = vadd.f32 %v1503_v6, %v1498_v21  ;;  %v1508_v30 = vadd.f32 %v1504_v7, %v1499_v22  ;;  %v1460_v43 = vmul.f32 %v1459_v58, %v1455_v17 }
 0x182   :  { %v1461_v1 = vmul.f32 %v1459_v58, %v1456_v19  ;;  %v1462_v20 = vmul.f32 %v1459_v58, %v1457_v16  ;;  %v1514_v24 = vadd.f32 %v1510_v25, %v1505_v63  ;;  %v1463_v61 = vmul.f32 %v1459_v58, %v1458_v56 }
 0x183   :  { %v1515_v57 = vadd.f32 %v1511_v62, %v1506_v18  ;;  %v1516_v9 = vadd.f32 %v1512_v12, %v1507_v60  ;;  %v1517_v37 = vadd.f32 %v1513_v41, %v1508_v30  ;;  %v1527_v23 = vstv %s3217_s16 }
 0x184   :  { %v1519_v53 = vadd.f32 %v1518_v15, %v1514_v24  ;;  %v1464_v10 = vadd.f32 %v1460_v43, %v3193_v48  ;;  %v1465_v14 = vadd.f32 %v1461_v1, %v3203_v2  ;;  %v1466_v36 = vadd.f32 %v1462_v20, %v1398_v38 }
 0x185   :  { %v1520_v4 = vadd.f32 %v1518_v15, %v1515_v57  ;;  %v1521_v31 = vadd.f32 %v1518_v15, %v1516_v9  ;;  %v1522_v40 = vadd.f32 %v1518_v15, %v1517_v37  ;;  %v1467_v54 = vadd.f32 %v1463_v61, %v1399_v55 }
 0x186   :  { %v1523_v49 = vmax.f32 %v1519_v53, 0.0 }
 0x187   :  { %v1524_v3 = vmax.f32 %v1520_v4, 0.0  ;;  %v1525_v35 = vmax.f32 %v1521_v31, 0.0  ;;  %v1526_v26 = vmax.f32 %v1522_v40, 0.0 }
 0x188   :  { %v1528_v59 = vmul.f32 %v1527_v23, %v1523_v49 }
 0x189   :  { %v1529_v58 = vmul.f32 %v1527_v23, %v1524_v3  ;;  %v1530_v52 = vmul.f32 %v1527_v23, %v1525_v35  ;;  %v1531_v17 = vmul.f32 %v1527_v23, %v1526_v26 }
 0x18a   :  { %v1532_v42 = vadd.f32 %v1528_v59, %v1464_v10 }
 0x18b   :  { %v1533_v32 = vadd.f32 %v1529_v58, %v1465_v14  ;;  %v1534_v50 = vadd.f32 %v1530_v52, %v1466_v36  ;;  %v1535_v19 = vadd.f32 %v1531_v17, %v1467_v54 }
 0x18c   :  { %1538 = vst [vmem:[#allocation11] sm:$0xff] %v1532_v42 }
 0x18d   :  { %1539 = vst [vmem:[#allocation11 + $0x8] sm:$0xff] %v1533_v32  ;;  %1540 = vst [vmem:[#allocation11 + $0x10] sm:$0xff] %v1534_v50 }
 0x18e   :  { %1541 = vst [vmem:[#allocation11 + $0x18] sm:$0xff] %v1535_v19 }
 0x18f   :  { %1811 = shalt.err (!%p1808_p10)
}
 0x190   :  { %1551 = dma.vmem_to_hbm [thread:$0]  %s1549_s18, 512, %s3242_s5, [#allocation5]  }
 0x191   :  { %1826 = dma.done.wait [#allocation5], 512  }
 0x192   :  { %1827 = vsyncadd [#allocation5], 4294966784 }
 0x193   :  { %1555 = vsyncpa [#allocation4], 1 }
 0x194   :  { %1556 = vsyncpa [#allocation5], 1 }
 0x195   :  { %1557 = vsyncpa [#allocation6], 1 }
 0x196   :  { %1558 = vsyncpa [#allocation9], 1 }

</bundles_post_ra>
